<compile_context>
chip_gen: v7x
topology: tpu7x:2x2x1
jax: 0.10.0
libtpu: 0.0.40
codegen_flags: <defaults>
</compile_context>

<pallas_src>
import functools

import jax
import jax.numpy as jnp
from jax.experimental import pallas as pl
from jax.experimental.pallas import tpu as pltpu


IN_DIM = 128     # word-embedding dim (module default 300; TPU-aligned here)
IMG_DIM = 128    # image-feature dim (module default 256; TPU-aligned here)
B = 4            # batch
P = 8            # panel pairs


def fctree_kernel(words_ref, img_ref, ind_ref,
                  wfc_ref, bfc_ref,
                  wword_ref,                           # (in_dim, 4*img_dim) stacked
                  wleaf_f_ref, bleaf_ref,
                  wmid_f_ref, bmid_ref,
                  wmer_f_ref, bmer_ref,
                  wroot_f_ref, broot_ref,
                  out_ref,
                  *, tile_b, panels, img_dim, compute_dtype):
    cdt = compute_dtype
    rows = tile_b * panels
    relu = lambda x: jnp.maximum(x, 0.0)

    # ---------------- word path: two fused matmuls for all nodes & batches ---
    # (tile_b*6, in_dim) block of word embeddings -> fc -> wide node projection.
    w = jnp.concatenate([words_ref[b] for b in range(tile_b)], axis=0)
    w_fc = (jnp.dot(w.astype(cdt), wfc_ref[...],
                    preferred_element_type=jnp.float32) + bfc_ref[...])
    # One matmul against [W_leaf_w | W_middle_w | W_merge_w | W_root_w].
    word_proj = jnp.dot(w_fc.astype(cdt), wword_ref[...],
                        preferred_element_type=jnp.float32)   # (tile_b*6, 4*img)

    def word_bcast(slot, node):
        # word term of `slot` for every batch in the tile, broadcast over panels.
        col0 = node * img_dim
        parts = [jnp.broadcast_to(
                     word_proj[b * 6 + slot:b * 6 + slot + 1,
                               col0:col0 + img_dim],
                     (panels, img_dim))
                 for b in range(tile_b)]
        return jnp.concatenate(parts, axis=0)

    # indicator: per-batch scalar read from SMEM, broadcast to (rows, 1).
    b0 = pl.program_id(0) * tile_b
    ind_col = jnp.concatenate(
        [jnp.full((panels, 1), ind_ref[b0 + b, 0], dtype=jnp.float32)
         for b in range(tile_b)], axis=0)

    # ---------------- leaf: one shared image matmul, reused for both leaves --
    img = img_ref[...].astype(cdt)                               # (rows, img_dim)
    img_leaf = (jnp.dot(img, wleaf_f_ref[...],
                        preferred_element_type=jnp.float32) + bleaf_ref[...])
    leaf_l = relu(img_leaf + word_bcast(3, 0))
    leaf_r = relu(img_leaf + word_bcast(5, 0))

    # ---------------- middle: both branches fused into one (2*rows) matmul ---
    leaf_lr = jnp.concatenate([leaf_l, leaf_r], axis=0).astype(cdt)
    mid_lr = (jnp.dot(leaf_lr, wmid_f_ref[...],
                      preferred_element_type=jnp.float32) + bmid_ref[...])
    out_l = relu(mid_lr[:rows] + word_bcast(2, 1))
    out_r = relu(mid_lr[rows:] + word_bcast(4, 1)) * ind_col

    # ---------------- merge ---------------------------------------------------
    merged = relu(jnp.dot((out_l + out_r).astype(cdt), wmer_f_ref[...],
                          preferred_element_type=jnp.float32)
                  + bmer_ref[...] + word_bcast(1, 2))

    # ---------------- root ----------------------------------------------------
    root = relu(jnp.dot(merged.astype(cdt), wroot_f_ref[...],
                        preferred_element_type=jnp.float32)
                + broot_ref[...] + word_bcast(0, 3))

    out_ref[...] = root.astype(out_ref.dtype)


def fc_tree_net(image_feature, words, indicator, params, *,
                tile_b=None, compute_dtype=jnp.float32):
    """image_feature: (B,P,img_dim), words: (B,6,in_dim), indicator: (B,1)."""
    b, p, img_dim = image_feature.shape
    in_dim = words.shape[-1]

    if tile_b is None:
        # Largest batch tile keeping rows modest while preserving >= 2 grid
        # steps when b > 1 (so v7x's second TensorCore gets a parallel step).
        tile_b = 1
        for t in range(1, b + 1):
            if b % t:
                continue
            if t * p > 512:
                break
            if b // t >= 2 or t == 1:
                tile_b = t
    assert b % tile_b == 0
    rows = tile_b * p

    cdt = compute_dtype

    # torch Linear weight is (out, in); concat order is [word, feature].
    def split_t(w):
        return w[:, :in_dim].T, w[:, in_dim:].T

    wleaf_w, wleaf_f = split_t(params["leaf_w"])
    wmid_w, wmid_f = split_t(params["middle_w"])
    wmer_w, wmer_f = split_t(params["merge_w"])
    wroot_w, wroot_f = split_t(params["root_w"])
    wfc_t = params["fc_w"].T

    # Stack all per-node word weights column-wise -> one wide matmul in-kernel.
    wword = jnp.concatenate([wleaf_w, wmid_w, wmer_w, wroot_w], axis=1)

    # Matmul operands in compute dtype (bf16 halves weight DMA + MXU passes on
    # v6e/v7x); biases stay f32 and are added post-accumulation.
    wfc_t, wword, wleaf_f, wmid_f, wmer_f, wroot_f = (
        x.astype(cdt) for x in (wfc_t, wword, wleaf_f, wmid_f, wmer_f, wroot_f))

    bfc = params["fc_b"][None, :].astype(jnp.float32)
    bleaf = params["leaf_b"][None, :].astype(jnp.float32)
    bmid = params["middle_b"][None, :].astype(jnp.float32)
    bmer = params["merge_b"][None, :].astype(jnp.float32)
    broot = params["root_b"][None, :].astype(jnp.float32)

    img_flat = image_feature.reshape(b * p, img_dim)

    # Weights/biases use constant index_maps -> block is revisited, so Pallas
    # keeps them resident in VMEM (no per-step re-DMA).
    def full2d(arr):
        return pl.BlockSpec(arr.shape, lambda i: (0, 0))

    in_specs = [
        pl.BlockSpec((tile_b, 6, in_dim), lambda i: (i, 0, 0)),    # words
        pl.BlockSpec((rows, img_dim), lambda i: (i, 0)),           # image features
        pl.BlockSpec(memory_space=pltpu.MemorySpace.SMEM),         # indicator
        full2d(wfc_t), full2d(bfc),
        full2d(wword),
        full2d(wleaf_f), full2d(bleaf),
        full2d(wmid_f), full2d(bmid),
        full2d(wmer_f), full2d(bmer),
        full2d(wroot_f), full2d(broot),
    ]

    kernel = functools.partial(
        fctree_kernel, tile_b=tile_b, panels=p, img_dim=img_dim,
        compute_dtype=cdt)

    out = pl.pallas_call(
        kernel,
        out_shape=jax.ShapeDtypeStruct((b * p, img_dim), jnp.float32),
        grid=(b // tile_b,),
        in_specs=in_specs,
        out_specs=pl.BlockSpec((rows, img_dim), lambda i: (i, 0)),
        compiler_params=pltpu.CompilerParams(
            dimension_semantics=("parallel",)),
    )(words, img_flat, indicator,
      wfc_t, bfc, wword,
      wleaf_f, bleaf, wmid_f, bmid, wmer_f, bmer, wroot_f, broot)

    return out   # (B*P, img_dim), matches torch's (-1, img_dim)


def fc_tree_net_reference(image_feature, words, indicator, params):
    """Plain-JAX (fp32) mirror of the PyTorch forward, for verification."""
    b, p, img_dim = image_feature.shape
    in_dim = words.shape[-1]

    def linear(x, w, bias):
        return jnp.dot(x, w.T, precision=jax.lax.Precision.HIGHEST) + bias

    x = linear(words.reshape(-1, in_dim), params["fc_w"], params["fc_b"])
    x = x.reshape(b, 6, in_dim)
    x = jnp.repeat(x[:, None], p, axis=1)                      # (B, P, 6, in_dim)
    ind = jnp.repeat(indicator[:, None], p, axis=1).reshape(-1, 1)

    leaf_left = x[:, :, 3, :].reshape(-1, in_dim)
    leaf_right = x[:, :, 5, :].reshape(-1, in_dim)
    inter_left = x[:, :, 2, :].reshape(-1, in_dim)
    inter_right = x[:, :, 4, :].reshape(-1, in_dim)
    merge_w = x[:, :, 1, :].reshape(-1, in_dim)
    root_w = x[:, :, 0, :].reshape(-1, in_dim)
    img = image_feature.reshape(-1, img_dim)

    relu = lambda v: jnp.maximum(v, 0.0)
    out_ll = relu(linear(jnp.concatenate([leaf_left, img], -1),
                         params["leaf_w"], params["leaf_b"]))
    out_lr = relu(linear(jnp.concatenate([leaf_right, img], -1),
                         params["leaf_w"], params["leaf_b"]))
    out_l = relu(linear(jnp.concatenate([inter_left, out_ll], -1),
                        params["middle_w"], params["middle_b"]))
    out_r = relu(linear(jnp.concatenate([inter_right, out_lr], -1),
                        params["middle_w"], params["middle_b"]))
    out_r = out_r * ind
    out_m = relu(linear(jnp.concatenate([merge_w, out_l + out_r], -1),
                        params["merge_w"], params["merge_b"]))
    out_root = relu(linear(jnp.concatenate([root_w, out_m], -1),
                           params["root_w"], params["root_b"]))
    return out_root


def init_params(key, in_dim, img_dim):
    ks = jax.random.split(key, 10)
    s = 0.05
    return {
        "fc_w": s * jax.random.normal(ks[0], (in_dim, in_dim), jnp.float32),
        "fc_b": s * jax.random.normal(ks[1], (in_dim,), jnp.float32),
        "leaf_w": s * jax.random.normal(ks[2], (img_dim, in_dim + img_dim), jnp.float32),
        "leaf_b": s * jax.random.normal(ks[3], (img_dim,), jnp.float32),
        "middle_w": s * jax.random.normal(ks[4], (img_dim, in_dim + img_dim), jnp.float32),
        "middle_b": s * jax.random.normal(ks[5], (img_dim,), jnp.float32),
        "merge_w": s * jax.random.normal(ks[6], (img_dim, in_dim + img_dim), jnp.float32),
        "merge_b": s * jax.random.normal(ks[7], (img_dim,), jnp.float32),
        "root_w": s * jax.random.normal(ks[8], (img_dim, in_dim + img_dim), jnp.float32),
        "root_b": s * jax.random.normal(ks[9], (img_dim,), jnp.float32),
    }


if __name__ == "__main__":
    key = jax.random.PRNGKey(0)
    k_img, k_words, k_ind, k_params = jax.random.split(key, 4)

    image_feature = jax.random.normal(k_img, (B, P, IMG_DIM), jnp.float32)
    words = jax.random.normal(k_words, (B, 6, IN_DIM), jnp.float32)
    indicator = (jax.random.uniform(k_ind, (B, 1)) > 0.5).astype(jnp.float32)
    params = init_params(k_params, IN_DIM, IMG_DIM)

    ref = fc_tree_net_reference(image_feature, words, indicator, params)

    # fp32 compute path (exact check against fp32 reference)
    out_f32 = jax.block_until_ready(
        fc_tree_net(image_feature, words, indicator, params,
                    compute_dtype=jnp.float32))
    assert out_f32.shape == (B * P, IMG_DIM), out_f32.shape
    err32 = float(jnp.max(jnp.abs(out_f32 - ref)))
    assert jnp.allclose(out_f32, ref, atol=2e-3, rtol=2e-3), err32

    # bf16 MXU-input path (f32 accumulation) — looser tolerance vs fp32 ref
    out_bf16 = jax.block_until_ready(
        fc_tree_net(image_feature, words, indicator, params,
                    compute_dtype=jnp.bfloat16))
    errbf = float(jnp.max(jnp.abs(out_bf16 - ref)))
    assert jnp.allclose(out_bf16, ref, atol=5e-2, rtol=5e-2), errbf

    print("KERNEL_OK")
</pallas_src>

<mosaic_0001>
module attributes {stable_mosaic.version = 11 : i64} {
  func.func @fctree_kernel(%arg0: i32, %arg1: memref<2x6x128xf32, #tpu.memory_space<vmem>>, %arg2: memref<16x128xf32, #tpu.memory_space<vmem>>, %arg3: memref<4x1xf32, #tpu.memory_space<smem>>, %arg4: memref<128x128xf32, #tpu.memory_space<vmem>>, %arg5: memref<1x128xf32, #tpu.memory_space<vmem>>, %arg6: memref<128x512xf32, #tpu.memory_space<vmem>>, %arg7: memref<128x128xf32, #tpu.memory_space<vmem>>, %arg8: memref<1x128xf32, #tpu.memory_space<vmem>>, %arg9: memref<128x128xf32, #tpu.memory_space<vmem>>, %arg10: memref<1x128xf32, #tpu.memory_space<vmem>>, %arg11: memref<128x128xf32, #tpu.memory_space<vmem>>, %arg12: memref<1x128xf32, #tpu.memory_space<vmem>>, %arg13: memref<128x128xf32, #tpu.memory_space<vmem>>, %arg14: memref<1x128xf32, #tpu.memory_space<vmem>>, %arg15: memref<16x128xf32, #tpu.memory_space<vmem>>) attributes {dimension_semantics = [#tpu.dimension_semantics<parallel>], iteration_bounds = array<i64: 2>, scalar_prefetch = 0 : i64, scratch_operands = 0 : i64, tpu.core_type = #tpu.core_type<tc>, window_params = [{transform_indices = @transform_0, window_bounds = array<i64: 2, 6, 128>}, {transform_indices = @transform_1, window_bounds = array<i64: 16, 128>}, {transform_indices = @transform_2, window_bounds = array<i64: 4, 1>}, {pipeline_mode = #tpu.pipeline_mode<synchronous>, transform_indices = @transform_3, window_bounds = array<i64: 128, 128>}, {pipeline_mode = #tpu.pipeline_mode<synchronous>, transform_indices = @transform_4, window_bounds = array<i64: 1, 128>}, {pipeline_mode = #tpu.pipeline_mode<synchronous>, transform_indices = @transform_5, window_bounds = array<i64: 128, 512>}, {pipeline_mode = #tpu.pipeline_mode<synchronous>, transform_indices = @transform_6, window_bounds = array<i64: 128, 128>}, {pipeline_mode = #tpu.pipeline_mode<synchronous>, transform_indices = @transform_7, window_bounds = array<i64: 1, 128>}, {pipeline_mode = #tpu.pipeline_mode<synchronous>, transform_indices = @transform_8, window_bounds = array<i64: 128, 128>}, {pipeline_mode = #tpu.pipeline_mode<synchronous>, transform_indices = @transform_9, window_bounds = array<i64: 1, 128>}, {pipeline_mode = #tpu.pipeline_mode<synchronous>, transform_indices = @transform_10, window_bounds = array<i64: 128, 128>}, {pipeline_mode = #tpu.pipeline_mode<synchronous>, transform_indices = @transform_11, window_bounds = array<i64: 1, 128>}, {pipeline_mode = #tpu.pipeline_mode<synchronous>, transform_indices = @transform_12, window_bounds = array<i64: 128, 128>}, {pipeline_mode = #tpu.pipeline_mode<synchronous>, transform_indices = @transform_13, window_bounds = array<i64: 1, 128>}, {transform_indices = @transform_14, window_bounds = array<i64: 16, 128>}]} {
    %c0 = arith.constant 0 : index
    %c0_0 = arith.constant 0 : index
    %c0_1 = arith.constant 0 : index
    %0 = vector.load %arg1[%c0, %c0_0, %c0_1] : memref<2x6x128xf32, #tpu.memory_space<vmem>>, vector<1x6x128xf32>
    %1 = vector.shape_cast %0 : vector<1x6x128xf32> to vector<6x128xf32>
    %c1 = arith.constant 1 : index
    %c0_2 = arith.constant 0 : index
    %c0_3 = arith.constant 0 : index
    %2 = vector.load %arg1[%c1, %c0_2, %c0_3] : memref<2x6x128xf32, #tpu.memory_space<vmem>>, vector<1x6x128xf32>
    %3 = vector.shape_cast %2 : vector<1x6x128xf32> to vector<6x128xf32>
    %4 = tpu.concatenate %1, %3 in 0 : vector<6x128xf32>, vector<6x128xf32> -> vector<12x128xf32>
    %c0_4 = arith.constant 0 : index
    %c0_5 = arith.constant 0 : index
    %5 = vector.load %arg4[%c0_4, %c0_5] : memref<128x128xf32, #tpu.memory_space<vmem>>, vector<128x128xf32>
    %cst = arith.constant dense<0.000000e+00> : vector<12x128xf32>
    %6 = tpu.matmul %4, %5, %cst {dimension_numbers = #tpu.dot_dimension_numbers<[1], [0], [0], [1], [0, 0, 1, 1], [], []>} : vector<12x128xf32>, vector<128x128xf32>, vector<12x128xf32> -> vector<12x128xf32>
    %c0_6 = arith.constant 0 : index
    %c0_7 = arith.constant 0 : index
    %7 = vector.load %arg5[%c0_6, %c0_7] : memref<1x128xf32, #tpu.memory_space<vmem>>, vector<1x128xf32>
    %8 = vector.broadcast %7 : vector<1x128xf32> to vector<12x128xf32>
    %9 = arith.addf %6, %8 : vector<12x128xf32>
    %c0_8 = arith.constant 0 : index
    %c0_9 = arith.constant 0 : index
    %10 = vector.load %arg6[%c0_8, %c0_9] : memref<128x512xf32, #tpu.memory_space<vmem>>, vector<128x512xf32>
    %cst_10 = arith.constant dense<0.000000e+00> : vector<12x512xf32>
    %11 = tpu.matmul %9, %10, %cst_10 {dimension_numbers = #tpu.dot_dimension_numbers<[1], [0], [0], [1], [0, 0, 1, 1], [], []>} : vector<12x128xf32>, vector<128x512xf32>, vector<12x512xf32> -> vector<12x512xf32>
    %c2_i32 = arith.constant 2 : i32
    %12 = arith.muli %arg0, %c2_i32 : i32
    %c0_i32 = arith.constant 0 : i32
    %13 = arith.addi %12, %c0_i32 : i32
    %14 = arith.index_cast %13 : i32 to index
    %c0_11 = arith.constant 0 : index
    %15 = memref.load %arg3[%14, %c0_11] : memref<4x1xf32, #tpu.memory_space<smem>>
    %16 = vector.broadcast %15 : f32 to vector<8x1xf32>
    %c1_i32 = arith.constant 1 : i32
    %17 = arith.addi %12, %c1_i32 : i32
    %18 = arith.index_cast %17 : i32 to index
    %c0_12 = arith.constant 0 : index
    %19 = memref.load %arg3[%18, %c0_12] : memref<4x1xf32, #tpu.memory_space<smem>>
    %20 = vector.broadcast %19 : f32 to vector<8x1xf32>
    %21 = tpu.concatenate %16, %20 in 0 : vector<8x1xf32>, vector<8x1xf32> -> vector<16x1xf32>
    %c0_13 = arith.constant 0 : index
    %c0_14 = arith.constant 0 : index
    %22 = vector.load %arg2[%c0_13, %c0_14] : memref<16x128xf32, #tpu.memory_space<vmem>>, vector<16x128xf32>
    %c0_15 = arith.constant 0 : index
    %c0_16 = arith.constant 0 : index
    %23 = vector.load %arg7[%c0_15, %c0_16] : memref<128x128xf32, #tpu.memory_space<vmem>>, vector<128x128xf32>
    %cst_17 = arith.constant dense<0.000000e+00> : vector<16x128xf32>
    %24 = tpu.matmul %22, %23, %cst_17 {dimension_numbers = #tpu.dot_dimension_numbers<[1], [0], [0], [1], [0, 0, 1, 1], [], []>} : vector<16x128xf32>, vector<128x128xf32>, vector<16x128xf32> -> vector<16x128xf32>
    %c0_18 = arith.constant 0 : index
    %c0_19 = arith.constant 0 : index
    %25 = vector.load %arg8[%c0_18, %c0_19] : memref<1x128xf32, #tpu.memory_space<vmem>>, vector<1x128xf32>
    %26 = vector.broadcast %25 : vector<1x128xf32> to vector<16x128xf32>
    %27 = arith.addf %24, %26 : vector<16x128xf32>
    %28 = vector.extract_strided_slice %11 {offsets = [3, 0], sizes = [1, 128], strides = [1, 1]} : vector<12x512xf32> to vector<1x128xf32>
    %29 = vector.shape_cast %28 : vector<1x128xf32> to vector<1x128xf32>
    %30 = vector.broadcast %29 : vector<1x128xf32> to vector<8x128xf32>
    %31 = vector.extract_strided_slice %11 {offsets = [9, 0], sizes = [1, 128], strides = [1, 1]} : vector<12x512xf32> to vector<1x128xf32>
    %32 = vector.shape_cast %31 : vector<1x128xf32> to vector<1x128xf32>
    %33 = vector.broadcast %32 : vector<1x128xf32> to vector<8x128xf32>
    %34 = tpu.concatenate %30, %33 in 0 : vector<8x128xf32>, vector<8x128xf32> -> vector<16x128xf32>
    %35 = arith.addf %27, %34 : vector<16x128xf32>
    %cst_20 = arith.constant 0.000000e+00 : f32
    %36 = vector.broadcast %cst_20 : f32 to vector<16x128xf32>
    %37 = arith.maximumf %35, %36 : vector<16x128xf32>
    %38 = vector.extract_strided_slice %11 {offsets = [5, 0], sizes = [1, 128], strides = [1, 1]} : vector<12x512xf32> to vector<1x128xf32>
    %39 = vector.shape_cast %38 : vector<1x128xf32> to vector<1x128xf32>
    %40 = vector.broadcast %39 : vector<1x128xf32> to vector<8x128xf32>
    %41 = vector.extract_strided_slice %11 {offsets = [11, 0], sizes = [1, 128], strides = [1, 1]} : vector<12x512xf32> to vector<1x128xf32>
    %42 = vector.shape_cast %41 : vector<1x128xf32> to vector<1x128xf32>
    %43 = vector.broadcast %42 : vector<1x128xf32> to vector<8x128xf32>
    %44 = tpu.concatenate %40, %43 in 0 : vector<8x128xf32>, vector<8x128xf32> -> vector<16x128xf32>
    %45 = arith.addf %27, %44 : vector<16x128xf32>
    %cst_21 = arith.constant 0.000000e+00 : f32
    %46 = vector.broadcast %cst_21 : f32 to vector<16x128xf32>
    %47 = arith.maximumf %45, %46 : vector<16x128xf32>
    %48 = tpu.concatenate %37, %47 in 0 : vector<16x128xf32>, vector<16x128xf32> -> vector<32x128xf32>
    %c0_22 = arith.constant 0 : index
    %c0_23 = arith.constant 0 : index
    %49 = vector.load %arg9[%c0_22, %c0_23] : memref<128x128xf32, #tpu.memory_space<vmem>>, vector<128x128xf32>
    %cst_24 = arith.constant dense<0.000000e+00> : vector<32x128xf32>
    %50 = tpu.matmul %48, %49, %cst_24 {dimension_numbers = #tpu.dot_dimension_numbers<[1], [0], [0], [1], [0, 0, 1, 1], [], []>} : vector<32x128xf32>, vector<128x128xf32>, vector<32x128xf32> -> vector<32x128xf32>
    %c0_25 = arith.constant 0 : index
    %c0_26 = arith.constant 0 : index
    %51 = vector.load %arg10[%c0_25, %c0_26] : memref<1x128xf32, #tpu.memory_space<vmem>>, vector<1x128xf32>
    %52 = vector.broadcast %51 : vector<1x128xf32> to vector<32x128xf32>
    %53 = arith.addf %50, %52 : vector<32x128xf32>
    %54 = vector.extract_strided_slice %53 {offsets = [0, 0], sizes = [16, 128], strides = [1, 1]} : vector<32x128xf32> to vector<16x128xf32>
    %55 = vector.extract_strided_slice %11 {offsets = [2, 128], sizes = [1, 128], strides = [1, 1]} : vector<12x512xf32> to vector<1x128xf32>
    %56 = vector.shape_cast %55 : vector<1x128xf32> to vector<1x128xf32>
    %57 = vector.broadcast %56 : vector<1x128xf32> to vector<8x128xf32>
    %58 = vector.extract_strided_slice %11 {offsets = [8, 128], sizes = [1, 128], strides = [1, 1]} : vector<12x512xf32> to vector<1x128xf32>
    %59 = vector.shape_cast %58 : vector<1x128xf32> to vector<1x128xf32>
    %60 = vector.broadcast %59 : vector<1x128xf32> to vector<8x128xf32>
    %61 = tpu.concatenate %57, %60 in 0 : vector<8x128xf32>, vector<8x128xf32> -> vector<16x128xf32>
    %62 = arith.addf %54, %61 : vector<16x128xf32>
    %cst_27 = arith.constant 0.000000e+00 : f32
    %63 = vector.broadcast %cst_27 : f32 to vector<16x128xf32>
    %64 = arith.maximumf %62, %63 : vector<16x128xf32>
    %65 = vector.extract_strided_slice %53 {offsets = [16, 0], sizes = [16, 128], strides = [1, 1]} : vector<32x128xf32> to vector<16x128xf32>
    %66 = vector.extract_strided_slice %11 {offsets = [4, 128], sizes = [1, 128], strides = [1, 1]} : vector<12x512xf32> to vector<1x128xf32>
    %67 = vector.shape_cast %66 : vector<1x128xf32> to vector<1x128xf32>
    %68 = vector.broadcast %67 : vector<1x128xf32> to vector<8x128xf32>
    %69 = vector.extract_strided_slice %11 {offsets = [10, 128], sizes = [1, 128], strides = [1, 1]} : vector<12x512xf32> to vector<1x128xf32>
    %70 = vector.shape_cast %69 : vector<1x128xf32> to vector<1x128xf32>
    %71 = vector.broadcast %70 : vector<1x128xf32> to vector<8x128xf32>
    %72 = tpu.concatenate %68, %71 in 0 : vector<8x128xf32>, vector<8x128xf32> -> vector<16x128xf32>
    %73 = arith.addf %65, %72 : vector<16x128xf32>
    %cst_28 = arith.constant 0.000000e+00 : f32
    %74 = vector.broadcast %cst_28 : f32 to vector<16x128xf32>
    %75 = arith.maximumf %73, %74 : vector<16x128xf32>
    %76 = vector.broadcast %21 : vector<16x1xf32> to vector<16x128xf32>
    %77 = arith.mulf %75, %76 : vector<16x128xf32>
    %78 = arith.addf %64, %77 : vector<16x128xf32>
    %c0_29 = arith.constant 0 : index
    %c0_30 = arith.constant 0 : index
    %79 = vector.load %arg11[%c0_29, %c0_30] : memref<128x128xf32, #tpu.memory_space<vmem>>, vector<128x128xf32>
    %cst_31 = arith.constant dense<0.000000e+00> : vector<16x128xf32>
    %80 = tpu.matmul %78, %79, %cst_31 {dimension_numbers = #tpu.dot_dimension_numbers<[1], [0], [0], [1], [0, 0, 1, 1], [], []>} : vector<16x128xf32>, vector<128x128xf32>, vector<16x128xf32> -> vector<16x128xf32>
    %c0_32 = arith.constant 0 : index
    %c0_33 = arith.constant 0 : index
    %81 = vector.load %arg12[%c0_32, %c0_33] : memref<1x128xf32, #tpu.memory_space<vmem>>, vector<1x128xf32>
    %82 = vector.broadcast %81 : vector<1x128xf32> to vector<16x128xf32>
    %83 = arith.addf %80, %82 : vector<16x128xf32>
    %84 = vector.extract_strided_slice %11 {offsets = [1, 256], sizes = [1, 128], strides = [1, 1]} : vector<12x512xf32> to vector<1x128xf32>
    %85 = vector.shape_cast %84 : vector<1x128xf32> to vector<1x128xf32>
    %86 = vector.broadcast %85 : vector<1x128xf32> to vector<8x128xf32>
    %87 = vector.extract_strided_slice %11 {offsets = [7, 256], sizes = [1, 128], strides = [1, 1]} : vector<12x512xf32> to vector<1x128xf32>
    %88 = vector.shape_cast %87 : vector<1x128xf32> to vector<1x128xf32>
    %89 = vector.broadcast %88 : vector<1x128xf32> to vector<8x128xf32>
    %90 = tpu.concatenate %86, %89 in 0 : vector<8x128xf32>, vector<8x128xf32> -> vector<16x128xf32>
    %91 = arith.addf %83, %90 : vector<16x128xf32>
    %cst_34 = arith.constant 0.000000e+00 : f32
    %92 = vector.broadcast %cst_34 : f32 to vector<16x128xf32>
    %93 = arith.maximumf %91, %92 : vector<16x128xf32>
    %c0_35 = arith.constant 0 : index
    %c0_36 = arith.constant 0 : index
    %94 = vector.load %arg13[%c0_35, %c0_36] : memref<128x128xf32, #tpu.memory_space<vmem>>, vector<128x128xf32>
    %cst_37 = arith.constant dense<0.000000e+00> : vector<16x128xf32>
    %95 = tpu.matmul %93, %94, %cst_37 {dimension_numbers = #tpu.dot_dimension_numbers<[1], [0], [0], [1], [0, 0, 1, 1], [], []>} : vector<16x128xf32>, vector<128x128xf32>, vector<16x128xf32> -> vector<16x128xf32>
    %c0_38 = arith.constant 0 : index
    %c0_39 = arith.constant 0 : index
    %96 = vector.load %arg14[%c0_38, %c0_39] : memref<1x128xf32, #tpu.memory_space<vmem>>, vector<1x128xf32>
    %97 = vector.broadcast %96 : vector<1x128xf32> to vector<16x128xf32>
    %98 = arith.addf %95, %97 : vector<16x128xf32>
    %99 = vector.extract_strided_slice %11 {offsets = [0, 384], sizes = [1, 128], strides = [1, 1]} : vector<12x512xf32> to vector<1x128xf32>
    %100 = vector.shape_cast %99 : vector<1x128xf32> to vector<1x128xf32>
    %101 = vector.broadcast %100 : vector<1x128xf32> to vector<8x128xf32>
    %102 = vector.extract_strided_slice %11 {offsets = [6, 384], sizes = [1, 128], strides = [1, 1]} : vector<12x512xf32> to vector<1x128xf32>
    %103 = vector.shape_cast %102 : vector<1x128xf32> to vector<1x128xf32>
    %104 = vector.broadcast %103 : vector<1x128xf32> to vector<8x128xf32>
    %105 = tpu.concatenate %101, %104 in 0 : vector<8x128xf32>, vector<8x128xf32> -> vector<16x128xf32>
    %106 = arith.addf %98, %105 : vector<16x128xf32>
    %cst_40 = arith.constant 0.000000e+00 : f32
    %107 = vector.broadcast %cst_40 : f32 to vector<16x128xf32>
    %108 = arith.maximumf %106, %107 : vector<16x128xf32>
    %c0_41 = arith.constant 0 : index
    %c0_42 = arith.constant 0 : index
    %109 = vector.load %arg15[%c0_41, %c0_42] : memref<16x128xf32, #tpu.memory_space<vmem>>, vector<16x128xf32>
    tpu.vector_store %arg15[%c0_41, %c0_42], %108 {strides = array<i32>} : memref<16x128xf32, #tpu.memory_space<vmem>>, vector<16x128xf32>,
    return
  }
  func.func @transform_0(%arg0: i32) -> (i32, i32, i32) {
    %c0_i32 = arith.constant 0 : i32
    %c0_i32_0 = arith.constant 0 : i32
    %c0_i32_1 = arith.constant 0 : i32
    return %arg0, %c0_i32, %c0_i32_0 : i32, i32, i32
  }
  func.func @transform_1(%arg0: i32) -> (i32, i32) {
    %c0_i32 = arith.constant 0 : i32
    %c0_i32_0 = arith.constant 0 : i32
    return %arg0, %c0_i32 : i32, i32
  }
  func.func @transform_2(%arg0: i32) -> (i32, i32) {
    %c0_i32 = arith.constant 0 : i32
    %c0_i32_0 = arith.constant 0 : i32
    %c0_i32_1 = arith.constant 0 : i32
    return %c0_i32, %c0_i32_0 : i32, i32
  }
  func.func @transform_3(%arg0: i32) -> (i32, i32) {
    %c0_i32 = arith.constant 0 : i32
    %c0_i32_0 = arith.constant 0 : i32
    %c0_i32_1 = arith.constant 0 : i32
    return %c0_i32, %c0_i32_0 : i32, i32
  }
  func.func @transform_4(%arg0: i32) -> (i32, i32) {
    %c0_i32 = arith.constant 0 : i32
    %c0_i32_0 = arith.constant 0 : i32
    %c0_i32_1 = arith.constant 0 : i32
    return %c0_i32, %c0_i32_0 : i32, i32
  }
  func.func @transform_5(%arg0: i32) -> (i32, i32) {
    %c0_i32 = arith.constant 0 : i32
    %c0_i32_0 = arith.constant 0 : i32
    %c0_i32_1 = arith.constant 0 : i32
    return %c0_i32, %c0_i32_0 : i32, i32
  }
  func.func @transform_6(%arg0: i32) -> (i32, i32) {
    %c0_i32 = arith.constant 0 : i32
    %c0_i32_0 = arith.constant 0 : i32
    %c0_i32_1 = arith.constant 0 : i32
    return %c0_i32, %c0_i32_0 : i32, i32
  }
  func.func @transform_7(%arg0: i32) -> (i32, i32) {
    %c0_i32 = arith.constant 0 : i32
    %c0_i32_0 = arith.constant 0 : i32
    %c0_i32_1 = arith.constant 0 : i32
    return %c0_i32, %c0_i32_0 : i32, i32
  }
  func.func @transform_8(%arg0: i32) -> (i32, i32) {
    %c0_i32 = arith.constant 0 : i32
    %c0_i32_0 = arith.constant 0 : i32
    %c0_i32_1 = arith.constant 0 : i32
    return %c0_i32, %c0_i32_0 : i32, i32
  }
  func.func @transform_9(%arg0: i32) -> (i32, i32) {
    %c0_i32 = arith.constant 0 : i32
    %c0_i32_0 = arith.constant 0 : i32
    %c0_i32_1 = arith.constant 0 : i32
    return %c0_i32, %c0_i32_0 : i32, i32
  }
  func.func @transform_10(%arg0: i32) -> (i32, i32) {
    %c0_i32 = arith.constant 0 : i32
    %c0_i32_0 = arith.constant 0 : i32
    %c0_i32_1 = arith.constant 0 : i32
    return %c0_i32, %c0_i32_0 : i32, i32
  }
  func.func @transform_11(%arg0: i32) -> (i32, i32) {
    %c0_i32 = arith.constant 0 : i32
    %c0_i32_0 = arith.constant 0 : i32
    %c0_i32_1 = arith.constant 0 : i32
    return %c0_i32, %c0_i32_0 : i32, i32
  }
  func.func @transform_12(%arg0: i32) -> (i32, i32) {
    %c0_i32 = arith.constant 0 : i32
    %c0_i32_0 = arith.constant 0 : i32
    %c0_i32_1 = arith.constant 0 : i32
    return %c0_i32, %c0_i32_0 : i32, i32
  }
  func.func @transform_13(%arg0: i32) -> (i32, i32) {
    %c0_i32 = arith.constant 0 : i32
    %c0_i32_0 = arith.constant 0 : i32
    %c0_i32_1 = arith.constant 0 : i32
    return %c0_i32, %c0_i32_0 : i32, i32
  }
  func.func @transform_14(%arg0: i32) -> (i32, i32) {
    %c0_i32 = arith.constant 0 : i32
    %c0_i32_0 = arith.constant 0 : i32
    return %arg0, %c0_i32 : i32, i32
  }
}

</mosaic_0001>

<bundles_post_ra>
// kernel: tpu_custom_call.1
= control target key start
LH: loop header
LB: loop body
LE: loop exit
PB: predicated region body
PF: predicated region fallthrough
CT: control target
= control target key end

     0   :  { %s2933_s0 = inlined_call_operand.vmem [shape: f32[4,6,128], index: 0, kind: input, shape index: {}]   ;;  %s2934_s1 = inlined_call_operand.vmem [shape: f32[32,128], index: 1, kind: input, shape index: {}]   ;;  %s2935_s2 = inlined_call_operand.vmem [shape: f32[4,1], index: 2, kind: input, shape index: {}]   ;;  %s2936_s3 = inlined_call_operand.hbm [shape: f32[128,128], index: 3, kind: input, shape index: {}]   ;;  %s2937_s4 = inlined_call_operand.vmem [shape: f32[1,128], index: 4, kind: input, shape index: {}]   ;;  %s2938_s5 = inlined_call_operand.hbm [shape: f32[128,512], index: 5, kind: input, shape index: {}]   ;;  %s2939_s6 = inlined_call_operand.hbm [shape: f32[128,128], index: 6, kind: input, shape index: {}]   ;;  %s2940_s7 = inlined_call_operand.vmem [shape: f32[1,128], index: 7, kind: input, shape index: {}]   ;;  %s2941_s8 = inlined_call_operand.hbm [shape: f32[128,128], index: 8, kind: input, shape index: {}]   ;;  %s2942_s9 = inlined_call_operand.vmem [shape: f32[1,128], index: 9, kind: input, shape index: {}]   ;;  %s2943_s10 = inlined_call_operand.hbm [shape: f32[128,128], index: 10, kind: input, shape index: {}]   ;;  %s2944_s11 = inlined_call_operand.vmem [shape: f32[1,128], index: 11, kind: input, shape index: {}]   ;;  %s2945_s12 = inlined_call_operand.hbm [shape: f32[128,128], index: 12, kind: input, shape index: {}]   ;;  %s2946_s13 = inlined_call_operand.vmem [shape: f32[1,128], index: 13, kind: input, shape index: {}]   ;;  %s2947_s14 = inlined_call_operand.hbm [shape: f32[32,128], index: 14, kind: output, shape index: {}]  }
   0x1   :  { %2962 = sst [smem:[#allocation29_spill]] %s2935_s2 }
   0x2   :  { %2963 = sst [smem:[#allocation30_spill]] %s2936_s3 }
   0x3   :  { %2964 = sst [smem:[#allocation31_spill]] %s2946_s13 }
   0x4   :  { %2965 = sst [smem:[#allocation32_spill]] %s2947_s14 }
   0x5   :  { %19 = vsyncpa [#allocation5], 0 }
   0x6   :  { %20 = vsyncpa [#allocation3], 0 }
   0x7   :  { %21 = vsyncpa [#allocation8], 0 }
   0x8   :  { %22 = vsyncpa [#allocation11], 0 }
   0x9   :  { %23 = vsyncpa [#allocation14], 0 }
   0xa   :  { %24 = vsyncpa [#allocation4], 0 }
   0xb   :  { %26 = vsyncpa [#allocation4 + $0x1], 0  ;;  %s2588_s29 = smov 0   ;;  %s2590_s30 = smov 0  }
   0xc   :  { %s2592_s15 = smov 0   ;;  %s2594_s16 = smov 0  }
   0xd LB: > { %2966 = sst [smem:[#allocation22_spill]] %s2483_s29  ;;  %s2609_s17 = sadd.s32 4294967295, %s2495_s16   ;;  %s2495_s16 = sphi %s2594_s16, %s3001_s16   ;;  %s2491_s15 = sphi %s2592_s15, %s3003_s15   ;;  %s2487_s30 = sphi %s2590_s30, %s3005_s30   ;;  %s2483_s29 = sphi %s2588_s29, %s3004_s29  }
   0xe   : > { %2967 = sst [smem:[#allocation23_spill]] %s2491_s15  ;;  %s1575_s18 = sadd.s32 4294967294, %s2495_s16  }
   0xf   : > { %2968 = sst [smem:[#allocation24_spill]] %s2495_s16  ;;  %s2613_s19 = sadd.s32 1, %s2495_s16  }
  0x10   : > { %2969 = sst [smem:[#allocation25_spill]] %s2613_s19  ;;  %s343_s20 = sadd.s32 1, %s2491_s15 }
  0x11   : > { %s340_s21 = ssub.s32 %s2495_s16, %s2613_s19  ;;  %p353_p0 = scmp.ne.s32.totalorder %s2491_s15, %s2487_s30 }
  0x12   : > { %p341_p1 = scmp.eq.s32.totalorder %s340_s21, 0  ;;  %p354_p2 = scmp.eq.s32.totalorder %s2609_s17, 1 }
  0x13   : > { %p359_p3 = scmp.ne.s32.totalorder %s2487_s30, %s2483_s29  ;;  %p360_p4 = scmp.eq.s32.totalorder %s1575_s18, 1 }
  0x14   : > { %s2624_s22 = scalar_select %p341_p1, %s2491_s15, %s343_s20  }
  0x15   : > { %p2626_p5 = por %p354_p2, %p353_p0  ;;  %p2630_p6 = por %p360_p4, %p359_p3 }
  0x16   : > { %2970 = sst [smem:[#allocation26_spill]] %s2624_s22  ;;  %p1576_p7 = scmp.ge.s32.totalorder %s2495_s16, 1 }
  0x17   : > { %s2971_s23 = scalar_select %p2626_p5, 1, 0 }
  0x18   : > { %s2973_s24 = scalar_select %p2630_p6, 1, 0 }
  0x19   : > { %2972 = sst [smem:[#allocation27_spill]] %s2971_s23  ;;  %p367_p8 = scmp.lt.s32.totalorder %s2495_s16, 3 }
  0x1a   : > { %2974 = sst [smem:[#allocation28_spill]] %s2973_s24  ;;  %p2955_p9 = scmp.eq.s32.totalorder %s2609_s17, 0 }
  0x1b   : > { %p2637_p10 = pnand %p1576_p7, %p367_p8  ;;  %s2497_s26 = smov [#allocation7]  }
  0x1c   : > { %s406_s27 = sshll.u32 %s2497_s26, 4  ;;  %s2977_s2 = sld [smem:[#allocation29_spill]]  ;;  %s407_s27 = int_to_ptr.vmem [resolvable:$true] %s406_s27 }
  0x1d   : > { %s2975_s25 = scalar_select %p2637_p10, 1, 0 }
  0x1e   : > { %p2141_p11 = pneg %p2637_p10  ;;  %s2498_s22 = smov [#allocation10]  }
  0x1f   : > { %s435_s15 = sshll.u32 %s2498_s22, 4  ;;  %s2230_s29 = scalar_lea.hbm %s2938_s5, 8192  ;;  %s436_s15 = int_to_ptr.vmem [resolvable:$true] %s435_s15 }
  0x20   : > { %p2645_p12 = pnand %p2955_p9, %p2141_p11  ;;  %p2231_p13 = scmp.ne.s32.totalorder %s2938_s5, %s2230_s29 }
  0x21   : > { %p2237_p3 = scmp.lt.u32.totalorder %s2230_s29, %s2938_s5 }
  0x22   : > { %s380_s21 = sshll.u32 %s2977_s2, 4  ;;  %p2660_p0 = pneg %p2645_p12  ;;  %s2676_s21 = int_to_ptr.vmem [resolvable:$true] %s380_s21 }
  0x24   : > { %p2233_p1 = pnand %p2660_p0, %p2231_p13 }
  0x26   : > { %p2234_p2 = pneg %p2233_p1 }
  0x28   : > { %p2239_p4 = pnand %p2237_p3, %p2234_p2 }
  0x2a   : > { %2242 = shalt.err (!%p2239_p4)
}
  0x2b   : > { %s2243_s19 = scalar_lea.vmem %s407_s27, 8192  ;;  %p2251_p9 = scmp.lt.s32.totalorder %s407_s27, %s407_s27 }
  0x2c   : > { %p2244_p7 = scmp.ne.s32.totalorder %s407_s27, %s2243_s19  ;;  %p2252_p6 = scmp.lt.s32.totalorder %s2243_s19, %s2243_s19 }
  0x2e   : > { %p2246_p8 = pnand %p2244_p7, %p2660_p0  ;;  %p2253_p5 = por %p2252_p6, %p2251_p9 }
  0x30   : > { %p2247_p11 = pneg %p2246_p8 }
  0x32   : > { %p2254_p10 = pnand %p2253_p5, %p2247_p11 }
  0x34   : > { %2257 = shalt.err (!%p2254_p10)
}
  0x35   : > { %s2499_s16 = smov 512   ;;  %s2500_s22 = smov 32  }
  0x36   : > { %2150 = dma.hbm_to_vmem [thread:$0]  (!%p2645_p12), %s2938_s5, 8192, %s407_s27, [#allocation8], %s2499_s16, %s2499_s16, %s2500_s22  }
  0x37   : > { %s2258_s20 = scalar_lea.hbm %s2941_s8, 2048 }
  0x38   : > { %p2259_p5 = scmp.ne.s32.totalorder %s2941_s8, %s2258_s20  ;;  %p2265_p10 = scmp.lt.u32.totalorder %s2258_s20, %s2941_s8 }
  0x3a   : > { %p2261_p6 = pnand %p2259_p5, %p2660_p0 }
  0x3c   : > { %p2262_p9 = pneg %p2261_p6 }
  0x3e   : > { %p2267_p13 = pnand %p2265_p10, %p2262_p9 }
  0x40   : > { %2270 = shalt.err (!%p2267_p13)
}
  0x41   : > { %s2271_s27 = scalar_lea.vmem %s436_s15, 2048  ;;  %p2279_p4 = scmp.lt.s32.totalorder %s436_s15, %s436_s15 }
  0x42   : > { %p2272_p1 = scmp.ne.s32.totalorder %s436_s15, %s2271_s27  ;;  %p2280_p7 = scmp.lt.s32.totalorder %s2271_s27, %s2271_s27 }
  0x44   : > { %p2274_p2 = pnand %p2272_p1, %p2660_p0  ;;  %p2281_p8 = por %p2280_p7, %p2279_p4 }
  0x46   : > { %p2275_p3 = pneg %p2274_p2 }
  0x48   : > { %p2282_p11 = pnand %p2281_p8, %p2275_p3 }
  0x4a   : > { %2285 = shalt.err (!%p2282_p11)
}
  0x4b   : > { %s2960_s2 = smov 128   ;;  %s2502_s13 = smov 8  }
  0x4c   : > { %2156 = dma.hbm_to_vmem [thread:$0]  (!%p2645_p12), %s2941_s8, 2048, %s436_s15, [#allocation11], %s2960_s2, %s2960_s2, %s2502_s13  }
  0x4d   : > { %s2286_s22 = scalar_lea.vmem %s2676_s21, 64  ;;  %p2294_p10 = scmp.lt.s32.totalorder %s2676_s21, %s2676_s21 }
  0x4e   : > { %p2287_p5 = scmp.ne.s32.totalorder %s2676_s21, %s2286_s22  ;;  %p2295_p13 = scmp.lt.s32.totalorder %s2286_s22, %s2286_s22 }
  0x50   : > { %p2289_p6 = pnand %p2287_p5, %p2660_p0  ;;  %p2296_p1 = por %p2295_p13, %p2294_p10 }
  0x52   : > { %p2290_p9 = pneg %p2289_p6 }
  0x54   : > { %p2297_p2 = pnand %p2296_p1, %p2290_p9 }
  0x56   : > { %2300 = shalt.err (!%p2297_p2)
}
  0x57   : > { %s2503_s24 = smov [#allocation2]   ;;  %s2504_s29 = smov [#allocation6]  }
  0x58   : > { %2144 = dma.vmem_to_smem (!%p2645_p12), %s2676_s21, 64, %s2503_s24, [#allocation5]  }
  0x59   : > { %s390_s26 = sshll.u32 %s2504_s29, 4  ;;  %s2505_s15 = smov [#allocation9]   ;;  %s391_s26 = int_to_ptr.vmem [resolvable:$true] %s390_s26 }
  0x5a   : > { %s419_s18 = sshll.u32 %s2505_s15, 4  ;;  %s2979_s3 = sld [smem:[#allocation30_spill]]  ;;  %s420_s18 = int_to_ptr.vmem [resolvable:$true] %s419_s18 }
  0x60   : > { %s2301_s27 = scalar_lea.hbm %s2979_s3, 2048 }
  0x61   : > { %p2302_p3 = scmp.ne.s32.totalorder %s2979_s3, %s2301_s27  ;;  %p2308_p8 = scmp.lt.u32.totalorder %s2301_s27, %s2979_s3 }
  0x63   : > { %p2304_p4 = pnand %p2302_p3, %p2660_p0 }
  0x65   : > { %p2305_p7 = pneg %p2304_p4 }
  0x67   : > { %p2310_p11 = pnand %p2308_p8, %p2305_p7 }
  0x69   : > { %2313 = shalt.err (!%p2310_p11)
}
  0x6a   : > { %s2314_s21 = scalar_lea.vmem %s391_s26, 2048  ;;  %p2322_p10 = scmp.lt.s32.totalorder %s391_s26, %s391_s26 }
  0x6b   : > { %p2315_p5 = scmp.ne.s32.totalorder %s391_s26, %s2314_s21  ;;  %p2323_p13 = scmp.lt.s32.totalorder %s2314_s21, %s2314_s21 }
  0x6d   : > { %p2317_p6 = pnand %p2315_p5, %p2660_p0  ;;  %p2324_p1 = por %p2323_p13, %p2322_p10 }
  0x6f   : > { %p2318_p9 = pneg %p2317_p6 }
  0x71   : > { %p2325_p2 = pnand %p2324_p1, %p2318_p9 }
  0x73   : > { %2328 = shalt.err (!%p2325_p2)
}
  0x74   : > { %s2980_s24 = smov 128   ;;  %s2329_s19 = scalar_lea.hbm %s2939_s6, 2048 }
  0x75   : > { %2147 = dma.hbm_to_vmem [thread:$0]  (!%p2645_p12), %s2979_s3, 2048, %s391_s26, [#allocation3], %s2980_s24, %s2980_s24, %s2502_s13  }
  0x76   : > { %p2330_p3 = scmp.ne.s32.totalorder %s2939_s6, %s2329_s19  ;;  %p2336_p8 = scmp.lt.u32.totalorder %s2329_s19, %s2939_s6 }
  0x78   : > { %p2332_p4 = pnand %p2330_p3, %p2660_p0 }
  0x7a   : > { %p2333_p7 = pneg %p2332_p4 }
  0x7c   : > { %p2338_p11 = pnand %p2336_p8, %p2333_p7 }
  0x7e   : > { %2341 = shalt.err (!%p2338_p11)
}
  0x7f   : > { %s2342_s21 = scalar_lea.vmem %s420_s18, 2048  ;;  %p2350_p10 = scmp.lt.s32.totalorder %s420_s18, %s420_s18 }
  0x80   : > { %p2343_p5 = scmp.ne.s32.totalorder %s420_s18, %s2342_s21  ;;  %p2351_p13 = scmp.lt.s32.totalorder %s2342_s21, %s2342_s21 }
  0x82   : > { %p2345_p6 = pnand %p2343_p5, %p2660_p0  ;;  %p2352_p1 = por %p2351_p13, %p2350_p10 }
  0x84   : > { %p2346_p9 = pneg %p2345_p6 }
  0x86   : > { %p2353_p2 = pnand %p2352_p1, %p2346_p9 }
  0x88   : > { %2356 = shalt.err (!%p2353_p2)
}
  0x89   : > { %2153 = dma.hbm_to_vmem [thread:$0]  (!%p2645_p12), %s2939_s6, 2048, %s420_s18, [#allocation8], %s2980_s24, %s2980_s24, %s2502_s13  }
  0x8a   : > { %s2506_s29 = smov [#allocation12]   ;;  %s2507_s20 = smov [#allocation13]  }
  0x8b   : > { %s451_s15 = sshll.u32 %s2506_s29, 4  ;;  %s467_s19 = sshll.u32 %s2507_s20, 4  ;;  %s452_s15 = int_to_ptr.vmem [resolvable:$true] %s451_s15  ;;  %s468_s19 = int_to_ptr.vmem [resolvable:$true] %s467_s19 }
  0x8c   : > { %s2357_s16 = scalar_lea.hbm %s2943_s10, 2048 }
  0x8d   : > { %p2358_p3 = scmp.ne.s32.totalorder %s2943_s10, %s2357_s16  ;;  %p2364_p8 = scmp.lt.u32.totalorder %s2357_s16, %s2943_s10 }
  0x8f   : > { %p2360_p4 = pnand %p2358_p3, %p2660_p0 }
  0x91   : > { %p2361_p7 = pneg %p2360_p4 }
  0x93   : > { %p2366_p11 = pnand %p2364_p8, %p2361_p7 }
  0x95   : > { %2369 = shalt.err (!%p2366_p11)
}
  0x96   : > { %s2370_s18 = scalar_lea.vmem %s452_s15, 2048  ;;  %p2378_p10 = scmp.lt.s32.totalorder %s452_s15, %s452_s15 }
  0x97   : > { %p2371_p5 = scmp.ne.s32.totalorder %s452_s15, %s2370_s18  ;;  %p2379_p13 = scmp.lt.s32.totalorder %s2370_s18, %s2370_s18 }
  0x99   : > { %p2373_p6 = pnand %p2371_p5, %p2660_p0  ;;  %p2380_p1 = por %p2379_p13, %p2378_p10 }
  0x9b   : > { %p2374_p9 = pneg %p2373_p6 }
  0x9d   : > { %p2381_p2 = pnand %p2380_p1, %p2374_p9 }
  0x9f   : > { %2384 = shalt.err (!%p2381_p2)
}
  0xa0   : > { %2159 = dma.hbm_to_vmem [thread:$0]  (!%p2645_p12), %s2943_s10, 2048, %s452_s15, [#allocation11], %s2980_s24, %s2980_s24, %s2502_s13  }
  0xa1   : > { %s2385_s27 = scalar_lea.hbm %s2945_s12, 2048 }
  0xa2   : > { %p2386_p3 = scmp.ne.s32.totalorder %s2945_s12, %s2385_s27  ;;  %p2392_p8 = scmp.lt.u32.totalorder %s2385_s27, %s2945_s12 }
  0xa4   : > { %p2388_p4 = pnand %p2386_p3, %p2660_p0 }
  0xa6   : > { %p2389_p7 = pneg %p2388_p4 }
  0xa8   : > { %p2394_p11 = pnand %p2392_p8, %p2389_p7 }
  0xaa   : > { %2397 = shalt.err (!%p2394_p11)
}
  0xab   : > { %s2398_s26 = scalar_lea.vmem %s468_s19, 2048  ;;  %p2406_p10 = scmp.lt.s32.totalorder %s468_s19, %s468_s19 }
  0xac   : > { %p2399_p5 = scmp.ne.s32.totalorder %s468_s19, %s2398_s26  ;;  %p2407_p13 = scmp.lt.s32.totalorder %s2398_s26, %s2398_s26 }
  0xae   : > { %p2401_p6 = pnand %p2399_p5, %p2660_p0  ;;  %p2408_p1 = por %p2407_p13, %p2406_p10 }
  0xb0   : > { %p2402_p9 = pneg %p2401_p6 }
  0xb2   : > { %p2409_p2 = pnand %p2408_p1, %p2402_p9 }
  0xb4   : > { %2412 = shalt.err (!%p2409_p2)
}
  0xb5   : > { %2162 = dma.hbm_to_vmem [thread:$0]  (!%p2645_p12), %s2945_s12, 2048, %s468_s19, [#allocation14], %s2980_s24, %s2980_s24, %s2502_s13  }
  0xb6   : > { %p2981_p3 = scmp.ne.s32.totalorder %s2975_s25, 0 }
  0xb7   : > { %p2982_p0 = scmp.eq.s32.totalorder (!%p2981_p3), %s2609_s17, 0 }
  0xb8   : > { %504 = sbr.rel (%p2981_p3) target bundleno = 1391 (0x56f), region = 76 }
  0xbf   : > { %2458 = dma.done.wait (%p2982_p0), [#allocation5], 64   ;;  %p2983_p4 = pmov %p2982_p0 }
  0xc0   : > { %p2984_p7 = pmov %p2982_p0 }
  0xc1   : > { %2460 = vsyncadd (%p2983_p4), [#allocation5], 4294967232 }
  0xc2   : > { %2462 = dma.done.wait (%p2984_p7), [#allocation3], 2048   ;;  %p2985_p8 = pmov %p2982_p0 }
  0xc3   : > { %p2986_p11 = pmov %p2982_p0 }
  0xc4   : > { %2464 = vsyncadd (%p2985_p8), [#allocation3], 4294965248 }
  0xc5   : > { %2466 = dma.done.wait (%p2986_p11), [#allocation8], 10240   ;;  %p2987_p12 = pmov %p2982_p0 }
  0xc6   : > { %p2988_p5 = pmov %p2982_p0 }
  0xc7   : > { %2468 = vsyncadd (%p2987_p12), [#allocation8], 4294957056 }
  0xc8   : > { %2470 = dma.done.wait (%p2988_p5), [#allocation11], 4096   ;;  %p2989_p6 = pmov %p2982_p0 }
  0xc9   : > { %p2990_p9 = pmov %p2982_p0 }
  0xca   : > { %2472 = vsyncadd (%p2989_p6), [#allocation11], 4294963200 }
  0xcb   : > { %2474 = dma.done.wait (%p2990_p9), [#allocation14], 2048   ;;  %p2991_p10 = pmov %p2982_p0 }
  0xcd   : > { %2476 = vsyncadd (%p2991_p10), [#allocation14], 4294965248 }
  0xce   : > { %534 = sfence }
  0xcf   : > { %v601_v0 = vld [vmem:[#allocation6] sm:$0xff]  ;;  %v602_v1 = vld [vmem:[#allocation6 + $0x8] sm:$0xff]  ;;  %v603_v2 = vld [vmem:[#allocation6 + $0x10] sm:$0xff]  ;;  %s1594_s14 = sshll.u32 %s2609_s17, 1  ;;  %vm599_vm0 = vcmask 1045504   ;;  %s2843_s27 = sshll.u32 %s2609_s17, 8 }
  0xd0   : > { %v1887_v3 = vpack.c.bf16 %v602_v1, %v601_v0  ;;  %v604_v4 = vld [vmem:[#allocation6 + $0x18] sm:$0xff]  ;;  %p581_p13 = scmp.lt.s32.totalorder %s1594_s14, 3  ;;  %v605_v6 = vld [vmem:[#allocation6 + $0x20] sm:$0xff]  ;;  %v606_v7 = vld [vmem:[#allocation6 + $0x28] sm:$0xff]  ;;  %s917_s23 = sld [smem:[#allocation2 + %s2843_s27]] }
  0xd1   : > { %v1891_v5 = vpack.c.bf16 %v604_v4, %v603_v2  ;;  %v1895_v8 = vpack.c.bf16 %v606_v7, %v605_v6  ;;  %v607_v9 = vld [vmem:[#allocation6 + $0x30] sm:$0xff]  ;;  %v700_v10 = vld [vmem:[#allocation7 + $0x8] sm:$0xff]  ;;  %v608_v12 = vld [vmem:[#allocation6 + $0x38] sm:$0xff]  ;;  %s1614_s16 = sadd.s32 128, %s2843_s27  ;;  %s2992_s19 = sld [smem:[#allocation31_spill]] }
  0xd2   : > { %1888 = vmatprep.subr.bf16.mxu0 %v1887_v3  ;;  %s3007_s14 = smov (!%p581_p13, %s1594_s14), 3  ;;  %v704_v11 = vld [vmem:[#allocation7 + $0x28] sm:$0xff]  ;;  %v699_v14 = vld [vmem:[#allocation7] sm:$0xff]  ;;  %v1899_v21 = vpack.c.bf16 %v608_v12, %v607_v9  ;;  %v611_v36 = vld [vmem:[#allocation6 + $0x50] sm:$0xff]  ;;  %s921_s22 = sld [smem:[#allocation2 + %s1614_s16]] }
  0xd3   : > { %1890 = vmatpush3.bf16.msra.mxu0 %v1887_v3  ;;  %s1595_s25 = sshll.u32 %s3007_s14, 3  ;;  %v1919_v13 = vpack.c.bf16 %v704_v11, %v700_v10  ;;  %v703_v15 = vld [vmem:[#allocation7 + $0x20] sm:$0xff]  ;;  %v708_v20 = vld [vmem:[#allocation7 + $0x48] sm:$0xff]  ;;  %v612_v37 = vld [vmem:[#allocation6 + $0x58] sm:$0xff]  ;;  %s2993_s3 = sld [smem:[#allocation27_spill]] }
  0xd4   : > { %1892 = vmatprep.subr.bf16.mxu0 %v1891_v5  ;;  %s584_s24 = scalar_lea.vmem %s2933_s0, %s1595_s25  ;;  %v1921_v18 = vpack.c.bf16 %v703_v15, %v699_v14  ;;  %v712_v22 = vld [vmem:[#allocation7 + $0x68] sm:$0xff]  ;;  %v707_v23 = vld [vmem:[#allocation7 + $0x40] sm:$0xff]  ;;  %v1907_v45 = vpack.c.bf16 %v612_v37, %v611_v36  ;;  %v615_v56 = vld [vmem:[#allocation6 + $0x70] sm:$0xff]  ;;  %s2838_s20 = scalar_lea.vmem %s2934_s1, %s1595_s25 }
  0xd5   : > { %v593_v16 = vld [vmem:[%s584_s24] sm:$0x3f]  ;;  %v2823_v17 = vld [vmem:[%s584_s24 + $0x8] sm:$0x3f]  ;;  %1920 = vmatprep.subr.bf16.mxu1 %v1919_v13  ;;  %v1923_v28 = vpack.c.bf16 %v712_v22, %v708_v20  ;;  %v616_v58 = vld [vmem:[#allocation6 + $0x78] sm:$0xff]  ;;  %s577_s25 = sand.u32 1, %s2487_s30  }
  0xd6   : > { %v597_v19 = vrot.slane %v2823_v17, 2  ;;  %1922 = vmatpush1.bf16.msra.mxu1 %v1921_v18  ;;  %v711_v24 = vld [vmem:[#allocation7 + $0x60] sm:$0xff]  ;;  %v610_v26 = vld [vmem:[#allocation6 + $0x48] sm:$0xff]  ;;  %v1915_v0 = vpack.c.bf16 %v616_v58, %v615_v56  ;;  %v702_v1 = vld [vmem:[#allocation7 + $0x18] sm:$0xff]  ;;  %s1593_s28 = sshll.u32 %s577_s25, 4  ;;  %s2994_s16 = sld [smem:[#allocation32_spill]] }
  0xd7   : > { %1894 = vmatpush3.bf16.msra.mxu0 %v1891_v5  ;;  %v609_v25 = vld [vmem:[#allocation6 + $0x40] sm:$0xff]  ;;  %v1925_v29 = vpack.c.bf16 %v711_v24, %v707_v23  ;;  %v716_v30 = vld [vmem:[#allocation7 + $0x88] sm:$0xff]  ;;  %1924 = vmatprep.subr.bf16.mxu1 %v1923_v28  ;;  %v706_v3 = vld [vmem:[#allocation7 + $0x38] sm:$0xff]  ;;  %s579_s2 = scalar_lea.vmem [#allocation15], %s1593_s28  ;;  %s2892_s21 = scalar_lea.sflag [#allocation4], %s577_s25 }
  0xd8   : > { %1896 = vmatprep.subr.bf16.mxu0 %v1895_v8  ;;  %v600_v27 = vsel %vm599_vm0, %v593_v16, %v597_v19  ;;  %v720_v31 = vld [vmem:[#allocation7 + $0xa8] sm:$0xff]  ;;  %v715_v33 = vld [vmem:[#allocation7 + $0x80] sm:$0xff]  ;;  %v1903_v35 = vpack.c.bf16 %v610_v26, %v609_v25  ;;  %v1951_v9 = vpack.c.bf16 %v706_v3, %v702_v1  ;;  %v701_v10 = vld [vmem:[#allocation7 + $0x10] sm:$0xff]  ;;  %s1429_s29 = sshll.u32 %s579_s2, 4  ;;  %s2890_s29 = int_to_ptr.vmem [resolvable:$true] %s1429_s29 }
  0xd9   : > { %1741 = vmatprep.mubr.f32.mxu0 %v600_v27  ;;  %v1927_v32 = vpack.c.bf16 %v720_v31, %v716_v30  ;;  %v719_v34 = vld [vmem:[#allocation7 + $0xa0] sm:$0xff]  ;;  %v724_v39 = vld [vmem:[#allocation7 + $0xc8] sm:$0xff]  ;;  %v705_v11 = vld [vmem:[#allocation7 + $0x30] sm:$0xff]  ;;  %s2413_s26 = scalar_lea.vmem %s2890_s29, 256  ;;  %p2996_p2 = scmp.ne.s32.totalorder %s2993_s3, 0 }
  0xda   : > { %1926 = vmatpush1.bf16.msra.mxu1 %v1925_v29  ;;  %v1929_v38 = vpack.c.bf16 %v719_v34, %v715_v33  ;;  %v728_v40 = vld [vmem:[#allocation7 + $0xe8] sm:$0xff]  ;;  %v723_v41 = vld [vmem:[#allocation7 + $0xc0] sm:$0xff]  ;;  %v710_v13 = vld [vmem:[#allocation7 + $0x58] sm:$0xff]  ;;  %v1953_v16 = vpack.c.bf16 %v705_v11, %v701_v10  ;;  %p2414_p1 = scmp.ne.s32.totalorder %s2890_s29, %s2413_s26 }
  0xdb   : > { %1898 = vmatpush3.bf16.msra.mxu0 %v1895_v8  ;;  %1928 = vmatprep.subr.bf16.mxu1 %v1927_v32  ;;  %v1931_v42 = vpack.c.bf16 %v728_v40, %v724_v39  ;;  %v727_v43 = vld [vmem:[#allocation7 + $0xe0] sm:$0xff]  ;;  %v732_v44 = vld [vmem:[#allocation7 + $0x108] sm:$0xff]  ;;  %v714_v14 = vld [vmem:[#allocation7 + $0x78] sm:$0xff] }
  0xdc   : > { %1900 = vmatprep.subr.bf16.mxu0 %v1899_v21  ;;  %v613_v46 = vld [vmem:[#allocation6 + $0x60] sm:$0xff]  ;;  %v1933_v47 = vpack.c.bf16 %v727_v43, %v723_v41  ;;  %v736_v48 = vld [vmem:[#allocation7 + $0x128] sm:$0xff]  ;;  %v1955_v18 = vpack.c.bf16 %v714_v14, %v710_v13  ;;  %v709_v20 = vld [vmem:[#allocation7 + $0x50] sm:$0xff]  ;;  %s2887_s17 = scalar_lea.hbm %s2994_s16, %s2843_s27  ;;  %p2415_p3 = pnand %p2414_p1, %p2996_p2 }
  0xdd   : > { %v614_v49 = vld [vmem:[#allocation6 + $0x68] sm:$0xff]  ;;  %v1935_v50 = vpack.c.bf16 %v736_v48, %v732_v44  ;;  %v731_v51 = vld [vmem:[#allocation7 + $0x100] sm:$0xff]  ;;  %v718_v22 = vld [vmem:[#allocation7 + $0x98] sm:$0xff]  ;;  %s2510_s27 = smov [#allocation15]  }
  0xde   : > { %1930 = vmatpush1.bf16.msra.mxu1 %v1929_v38  ;;  %v735_v52 = vld [vmem:[#allocation7 + $0x120] sm:$0xff]  ;;  %v740_v53 = vld [vmem:[#allocation7 + $0x148] sm:$0xff]  ;;  %v1911_v55 = vpack.c.bf16 %v614_v49, %v613_v46  ;;  %v722_v23 = vld [vmem:[#allocation7 + $0xb8] sm:$0xff]  ;;  %p2416_p0 = pneg %p2415_p3  ;;  %s2417_s15 = sshll.u32 %s2510_s27, 4  ;;  %s2418_s15 = int_to_ptr.vmem [resolvable:$false] %s2417_s15 }
  0xdf   : > { %1902 = vmatpush3.bf16.msra.mxu0 %v1899_v21  ;;  %1932 = vmatprep.subr.bf16.mxu1 %v1931_v42  ;;  %v744_v54 = vld [vmem:[#allocation7 + $0x168] sm:$0xff]  ;;  %v1937_v57 = vpack.c.bf16 %v735_v52, %v731_v51  ;;  %v739_v60 = vld [vmem:[#allocation7 + $0x140] sm:$0xff]  ;;  %v713_v21 = vld [vmem:[#allocation7 + $0x70] sm:$0xff]  ;;  %v1959_v25 = vpack.c.bf16 %v722_v23, %v718_v22  ;;  %s2419_s18 = scalar_lea.vmem %s2418_s15, 512  ;;  %p2420_p4 = scmp.lt.s32.totalorder %s2890_s29, %s2418_s15 }
  0xe0   : > { %1904 = vmatprep.subr.bf16.mxu0 %v1903_v35  ;;  %v1939_v59 = vpack.c.bf16 %v744_v54, %v740_v53  ;;  %v743_v61 = vld [vmem:[#allocation7 + $0x160] sm:$0xff]  ;;  %v748_v62 = vld [vmem:[#allocation7 + $0x188] sm:$0xff]  ;;  %v1957_v24 = vpack.c.bf16 %v713_v21, %v709_v20  ;;  %v717_v26 = vld [vmem:[#allocation7 + $0x90] sm:$0xff]  ;;  %p2421_p7 = scmp.lt.s32.totalorder %s2419_s18, %s2413_s26 }
  0xe1   : > { %v752_v63 = vld [vmem:[#allocation7 + $0x1a8] sm:$0xff]  ;;  %v1941_v2 = vpack.c.bf16 %v743_v61, %v739_v60  ;;  %v747_v5 = vld [vmem:[#allocation7 + $0x180] sm:$0xff]  ;;  %v721_v27 = vld [vmem:[#allocation7 + $0xb0] sm:$0xff] }
  0xe2   : > { %1934 = vmatpush1.bf16.msra.mxu1 %v1933_v47  ;;  %v1943_v4 = vpack.c.bf16 %v752_v63, %v748_v62  ;;  %v751_v6 = vld [vmem:[#allocation7 + $0x1a0] sm:$0xff]  ;;  %v756_v7 = vld [vmem:[#allocation7 + $0x1c8] sm:$0xff]  ;;  %v726_v28 = vld [vmem:[#allocation7 + $0xd8] sm:$0xff]  ;;  %v1961_v30 = vpack.c.bf16 %v721_v27, %v717_v26  ;;  %v2508_v63 = vmov 0.0   ;;  %p2422_p8 = por %p2421_p7, %p2420_p4 }
  0xe3   : > { %1906 = vmatpush3.bf16.msra.mxu0 %v1903_v35  ;;  %1936 = vmatprep.subr.bf16.mxu1 %v1935_v50  ;;  %v760_v8 = vld [vmem:[#allocation7 + $0x1e8] sm:$0xff]  ;;  %v1945_v12 = vpack.c.bf16 %v751_v6, %v747_v5  ;;  %v730_v29 = vld [vmem:[#allocation7 + $0xf8] sm:$0xff]  ;;  %v725_v32 = vld [vmem:[#allocation7 + $0xd0] sm:$0xff] }
  0xe4   : > { %1908 = vmatprep.subr.bf16.mxu0 %v1907_v45  ;;  %v1947_v15 = vpack.c.bf16 %v760_v8, %v756_v7  ;;  %v1963_v31 = vpack.c.bf16 %v730_v29, %v726_v28  ;;  %v729_v33 = vld [vmem:[#allocation7 + $0xf0] sm:$0xff]  ;;  %v734_v34 = vld [vmem:[#allocation7 + $0x118] sm:$0xff]  ;;  %v755_v51 = vld [vmem:[#allocation7 + $0x1c0] sm:$0xff]  ;;  %827 = vmatprep.mubr.f32.mxu1 %v2508_v63  ;;  %p2423_p11 = pnand %p2422_p8, %p2416_p0 }
  0xe5   : > { %v738_v35 = vld [vmem:[#allocation7 + $0x138] sm:$0xff]  ;;  %v1965_v36 = vpack.c.bf16 %v729_v33, %v725_v32  ;;  %v737_v37 = vld [vmem:[#allocation7 + $0x130] sm:$0xff]  ;;  %v759_v52 = vld [vmem:[#allocation7 + $0x1e0] sm:$0xff] }
  0xe6   : > { %1938 = vmatpush1.bf16.msra.mxu1 %v1937_v57  ;;  %v1967_v17 = vpack.c.bf16 %v738_v35, %v734_v34  ;;  %v742_v38 = vld [vmem:[#allocation7 + $0x158] sm:$0xff]  ;;  %v741_v42 = vld [vmem:[#allocation7 + $0x150] sm:$0xff]  ;;  %v1949_v54 = vpack.c.bf16 %v759_v52, %v755_v51  ;;  %v925_v60 = vld [vmem:[#allocation9] sm:$0xff] }
  0xe7   : > { %1910 = vmatpush3.bf16.msra.mxu0 %v1907_v45  ;;  %1940 = vmatprep.subr.bf16.mxu1 %v1939_v59  ;;  %v746_v39 = vld [vmem:[#allocation7 + $0x178] sm:$0xff]  ;;  %v745_v43 = vld [vmem:[#allocation7 + $0x170] sm:$0xff]  ;;  %v926_v61 = vld [vmem:[#allocation9 + $0x8] sm:$0xff] }
  0xe8   : > { %1912 = vmatprep.subr.bf16.mxu0 %v1911_v55  ;;  %v1971_v41 = vpack.c.bf16 %v746_v39, %v742_v38  ;;  %v750_v44 = vld [vmem:[#allocation7 + $0x198] sm:$0xff]  ;;  %v1973_v46 = vpack.c.bf16 %v745_v43, %v741_v42  ;;  %v749_v48 = vld [vmem:[#allocation7 + $0x190] sm:$0xff]  ;;  %v1983_v62 = vpack.c.bf16 %v926_v61, %v925_v60  ;;  %v929_v7 = vld [vmem:[#allocation9 + $0x20] sm:$0xff] }
  0xe9   : > { %v754_v45 = vld [vmem:[#allocation7 + $0x1b8] sm:$0xff]  ;;  %v753_v49 = vld [vmem:[#allocation7 + $0x1b0] sm:$0xff]  ;;  %v930_v8 = vld [vmem:[#allocation9 + $0x28] sm:$0xff] }
  0xea   : > { %1942 = vmatpush1.bf16.msra.mxu1 %v1941_v2  ;;  %v1975_v47 = vpack.c.bf16 %v754_v45, %v750_v44  ;;  %v1977_v50 = vpack.c.bf16 %v753_v49, %v749_v48  ;;  %v758_v53 = vld [vmem:[#allocation7 + $0x1d8] sm:$0xff]  ;;  %v757_v56 = vld [vmem:[#allocation7 + $0x1d0] sm:$0xff]  ;;  %v1991_v10 = vpack.c.bf16 %v930_v8, %v929_v7  ;;  %v923_v11 = vld [vmem:[%s2838_s20] sm:$0xff] }
  0xeb   : > { %1914 = vmatpush3.bf16.msra.mxu0 %v1911_v55  ;;  %1944 = vmatprep.subr.bf16.mxu1 %v1943_v4  ;;  %v762_v55 = vld [vmem:[#allocation7 + $0x1f8] sm:$0xff]  ;;  %v761_v57 = vld [vmem:[#allocation7 + $0x1f0] sm:$0xff]  ;;  %v937_v23 = vld [vmem:[#allocation9 + $0x60] sm:$0xff] }
  0xec   : > { %1916 = vmatprep.subr.bf16.mxu0 %v1915_v0  ;;  %v1979_v58 = vpack.c.bf16 %v762_v55, %v758_v53  ;;  %v1981_v59 = vpack.c.bf16 %v761_v57, %v757_v56  ;;  %v927_v1 = vld [vmem:[#allocation9 + $0x10] sm:$0xff]  ;;  %v928_v2 = vld [vmem:[#allocation9 + $0x18] sm:$0xff]  ;;  %v924_v29 = vld [vmem:[%s2838_s20 + $0x8] sm:$0xff]  ;;  %v2509_v55 = vmov 0  }
  0xed   : > { %v1987_v6 = vpack.c.bf16 %v928_v2, %v927_v1  ;;  %v932_v13 = vld [vmem:[#allocation9 + $0x38] sm:$0xff]  ;;  %v935_v20 = vld [vmem:[#allocation9 + $0x50] sm:$0xff]  ;;  %v1193_v52 = vld [vmem:[#allocation12] sm:$0xff]  ;;  %2229 = vset.pattern.permute.xlu0 %v2509_v55  ;;  %v922_v1 = vstv %s921_s22  ;;  %s2995_s22 = smov %s2994_s16 }
  0xee   : > { %1946 = vmatpush1.bf16.msra.mxu1 %v1945_v12  ;;  %v931_v12 = vld [vmem:[#allocation9 + $0x30] sm:$0xff]  ;;  %v936_v21 = vld [vmem:[#allocation9 + $0x58] sm:$0xff]  ;;  %v1194_v53 = vld [vmem:[#allocation12 + $0x8] sm:$0xff] }
  0xef   : > { %1918 = vmatpush3.bf16.msra.mxu0 %v1915_v0  ;;  %1948 = vmatprep.subr.bf16.mxu1 %v1947_v15  ;;  %v1599_v0 = vld [vmem:[%s2937_s4] ss:$0 sm:$0xff]  ;;  %v1995_v14 = vpack.c.bf16 %v932_v13, %v931_v12  ;;  %v2003_v22 = vpack.c.bf16 %v936_v21, %v935_v20  ;;  %v939_v26 = vld [vmem:[#allocation9 + $0x70] sm:$0xff]  ;;  %v940_v27 = vld [vmem:[#allocation9 + $0x78] sm:$0xff]  ;;  %v2047_v56 = vpack.c.bf16 %v1194_v53, %v1193_v52 }
  0xf0   : > { %1952 = vmatprep.subr.bf16.mxu0 %v1951_v9  ;;  %v933_v15 = vld [vmem:[#allocation9 + $0x40] sm:$0xff]  ;;  %v2011_v28 = vpack.c.bf16 %v940_v27, %v939_v26  ;;  %v1049_v32 = vld [vmem:[#allocation10 + $0x10] sm:$0xff]  ;;  %v1050_v34 = vld [vmem:[#allocation10 + $0x18] sm:$0xff] }
  0xf1   : > { %v2019_v35 = vpack.c.bf16 %v1050_v34, %v1049_v32  ;;  %v1054_v38 = vld [vmem:[#allocation10 + $0x38] sm:$0xff]  ;;  %v1057_v43 = vld [vmem:[#allocation10 + $0x50] sm:$0xff]  ;;  %v1198_v60 = vld [vmem:[#allocation12 + $0x28] sm:$0xff] }
  0xf2   : > { %1742 = vmatmul.mubr.f32.vlgmr.msra.gmra.mrb[0].mxu0 %v597_v19  ;;  %v733_v19 = vld [vmem:[#allocation7 + $0x110] sm:$0xff]  ;;  %1950 = vmatpush1.bf16.msra.mxu1 %v1949_v54  ;;  %v1058_v44 = vld [vmem:[#allocation10 + $0x58] sm:$0xff]  ;;  %v1205_v52 = vld [vmem:[#allocation12 + $0x60] sm:$0xff] }
  0xf3   : > { %1954 = vmatpush1.bf16.msra.mxu0 %v1953_v16  ;;  %v1969_v40 = vpack.c.bf16 %v737_v37, %v733_v19  ;;  %904 = vmatprep.mubr.f32.mxu0 %v2508_v63  ;;  %v934_v16 = vld [vmem:[#allocation9 + $0x48] sm:$0xff]  ;;  %v1053_v37 = vld [vmem:[#allocation10 + $0x30] sm:$0xff]  ;;  %v2035_v45 = vpack.c.bf16 %v1058_v44, %v1057_v43  ;;  %v1196_v57 = vld [vmem:[#allocation12 + $0x18] sm:$0xff] }
  0xf4   : > { %1956 = vmatprep.subr.bf16.mxu0 %v1955_v18  ;;  %1984 = vmatprep.subr.bf16.mxu1 %v1983_v62  ;;  %v1999_v18 = vpack.c.bf16 %v934_v16, %v933_v15  ;;  %v2027_v39 = vpack.c.bf16 %v1054_v38, %v1053_v37  ;;  %v1061_v49 = vld [vmem:[#allocation10 + $0x70] sm:$0xff]  ;;  %v1206_v53 = vld [vmem:[#allocation12 + $0x68] sm:$0xff] }
  0xf5   : > { %v1195_v54 = vld [vmem:[#allocation12 + $0x10] sm:$0xff] }
  0xf6   : > { %v1207_v55 = vld [vmem:[#allocation12 + $0x70] sm:$0xff] }
  0xf7   : > { %1958 = vmatpush1.bf16.msra.mxu0 %v1957_v24  ;;  %v938_v24 = vld [vmem:[#allocation9 + $0x68] sm:$0xff] }
  0xf8   : > { %1960 = vmatprep.subr.bf16.mxu0 %v1959_v25  ;;  %v2007_v25 = vpack.c.bf16 %v938_v24, %v937_v23 }
  0xfb   : > { %1962 = vmatpush1.bf16.msra.mxu0 %v1961_v30  ;;  %v1047_v30 = vld [vmem:[#allocation10] sm:$0xff] }
  0xfc   : > { %1964 = vmatprep.subr.bf16.mxu0 %v1963_v31  ;;  %v1048_v31 = vld [vmem:[#allocation10 + $0x8] sm:$0xff] }
  0xfd   : > { %v2015_v33 = vpack.c.bf16 %v1048_v31, %v1047_v30  ;;  %v1603_v31 = vld [vmem:[%s2940_s7] ss:$0 sm:$0xff] }
  0xff   : > { %1966 = vmatpush1.bf16.msra.mxu0 %v1965_v36  ;;  %v1051_v36 = vld [vmem:[#allocation10 + $0x20] sm:$0xff] }
 0x100   : > { %1968 = vmatprep.subr.bf16.mxu0 %v1967_v17  ;;  %v1052_v17 = vld [vmem:[#allocation10 + $0x28] sm:$0xff] }
 0x101   : > { %v2023_v19 = vpack.c.bf16 %v1052_v17, %v1051_v36 }
 0x103   : > { %1970 = vmatpush1.bf16.msra.mxu0 %v1969_v40  ;;  %v1055_v40 = vld [vmem:[#allocation10 + $0x40] sm:$0xff] }
 0x104   : > { %1972 = vmatprep.subr.bf16.mxu0 %v1971_v41  ;;  %v1056_v41 = vld [vmem:[#allocation10 + $0x48] sm:$0xff] }
 0x105   : > { %v2031_v42 = vpack.c.bf16 %v1056_v41, %v1055_v40 }
 0x107   : > { %1974 = vmatpush1.bf16.msra.mxu0 %v1973_v46  ;;  %v1059_v46 = vld [vmem:[#allocation10 + $0x60] sm:$0xff] }
 0x108   : > { %1976 = vmatprep.subr.bf16.mxu0 %v1975_v47  ;;  %v1060_v47 = vld [vmem:[#allocation10 + $0x68] sm:$0xff] }
 0x109   : > { %v2039_v48 = vpack.c.bf16 %v1060_v47, %v1059_v46  ;;  %v1201_v46 = vld [vmem:[#allocation12 + $0x40] sm:$0xff]  ;;  %v1202_v47 = vld [vmem:[#allocation12 + $0x48] sm:$0xff] }
 0x10b   : > { %1978 = vmatpush1.bf16.msra.mxu0 %v1977_v50  ;;  %v1062_v50 = vld [vmem:[#allocation10 + $0x78] sm:$0xff] }
 0x10c   : > { %1980 = vmatprep.subr.bf16.mxu0 %v1979_v58  ;;  %v2043_v51 = vpack.c.bf16 %v1062_v50, %v1061_v49  ;;  %v2051_v58 = vpack.c.bf16 %v1196_v57, %v1195_v54  ;;  %v1203_v49 = vld [vmem:[#allocation12 + $0x50] sm:$0xff]  ;;  %v1204_v50 = vld [vmem:[#allocation12 + $0x58] sm:$0xff]  ;;  %v2071_v54 = vpack.c.bf16 %v1206_v53, %v1205_v52 }
 0x10f   : > { %1982 = vmatpush1.bf16.msra.mxu0 %v1981_v59  ;;  %v1197_v59 = vld [vmem:[#allocation12 + $0x20] sm:$0xff] }
 0x110   : > { %2016 = vmatprep.subr.bf16.mxu0 %v2015_v33  ;;  %v2055_v61 = vpack.c.bf16 %v1198_v60, %v1197_v59  ;;  %v1304_v59 = vld [vmem:[#allocation13 + $0x8] sm:$0xff]  ;;  %v1305_v60 = vld [vmem:[#allocation13 + $0x10] sm:$0xff] }
 0x1c5   : > { %v1743_v3 = vpop.f32.mrb[0].mxu0 }
 0x1c6   : > { %v690_v4 = vpop.f32.mrb[1].mxu0  ;;  %v696_v9 = vadd.f32 %v1743_v3, %v1599_v0  ;;  %v1023_v3 = vlaneseq }
 0x1c7   : > { %v691_v5 = vadd.f32 %v1599_v0, %v690_v4  ;;  %v918_v0 = vstv %s917_s23 }
 0x1c8   : > { %1181 = vperm.xlu0 %2229, %v918_v0   ;;  %v1024_v4 = vshrl.u32 %v1023_v3, 7  ;;  %v1307_v0 = vld [vmem:[#allocation13 + $0x20] sm:$0xff]  ;;  %v1309_v3 = vld [vmem:[#allocation13 + $0x30] sm:$0xff] }
 0x1c9   : > { %828 = vmatmul.mubr.f32.vlgmr.msra.gmra.mrb[0].mxu1 %v691_v5  ;;  %905 = vmatmul.mubr.f32.vlgmr.msra.gmra.mrb[2].mxu0 %v691_v5 }
 0x1ca   : > { %1986 = vmatpush3.bf16.msra.mxu1 %v1983_v62  ;;  %833 = vmatprep.mubr.f32.mxu1 %v2508_v63  ;;  %v1199_v62 = vld [vmem:[#allocation12 + $0x30] sm:$0xff]  ;;  %v1029_v5 = vsub.s32 1, %v1024_v4  ;;  %v1157_v7 = vsub.s32 2, %v1024_v4  ;;  %v1169_v8 = vsub.s32 4, %v1024_v4  ;;  %v1037_v30 = vsub.s32 5, %v1024_v4 }
 0x1cb   : > { %910 = vmatprep.mubr.f32.mxu0 %v2508_v63  ;;  %1988 = vmatprep.subr.bf16.mxu1 %v1987_v6  ;;  %v1200_v63 = vld [vmem:[#allocation12 + $0x38] sm:$0xff] }
 0x1cc   : > { %2018 = vmatpush3.bf16.msra.mxu0 %v2015_v33  ;;  %v2059_v2 = vpack.c.bf16 %v1200_v63, %v1199_v62  ;;  %1186 = vperm.xlu0 %2229, %v922_v1   ;;  %v1306_v62 = vld [vmem:[#allocation13 + $0x18] sm:$0xff]  ;;  %v1308_v1 = vld [vmem:[#allocation13 + $0x28] sm:$0xff] }
 0x1cd   : > { %834 = vmatmul.mubr.f32.gmra.mrb[2].mxu1 %v696_v9  ;;  %911 = vmatmul.mubr.f32.gmra.mrb[4].mxu0 %v696_v9  ;;  %v1161_v9 = vsub.s32 0, %v1024_v4  ;;  %v2083_v63 = vpack.c.bf16 %v1306_v62, %v1305_v60 }
 0x1ce   : > { %1990 = vmatpush3.bf16.msra.mxu1 %v1987_v6  ;;  %1776 = vmatprep.mubr.f32.mxu1 %v923_v11  ;;  %v1297_v6 = vsub.s32 7, %v1024_v4 }
 0x1cf   : > { %1992 = vmatprep.subr.bf16.mxu1 %v1991_v10  ;;  %2020 = vmatprep.subr.bf16.mxu0 %v2019_v35 }
 0x1d0   : > { %2022 = vmatpush3.bf16.msra.mxu0 %v2019_v35 }
 0x1d1   : > { %2024 = vmatprep.subr.bf16.mxu0 %v2023_v19 }
 0x1d2   : > { %1994 = vmatpush3.bf16.msra.mxu1 %v1991_v10  ;;  %v1407_v10 = vsub.s32 6, %v1024_v4 }
 0x1d3   : > { %1996 = vmatprep.subr.bf16.mxu1 %v1995_v14 }
 0x1d4   : > { %2026 = vmatpush3.bf16.msra.mxu0 %v2023_v19 }
 0x1d5   : > { %2028 = vmatprep.subr.bf16.mxu0 %v2027_v39 }
 0x1d6   : > { %1998 = vmatpush3.bf16.msra.mxu1 %v1995_v14 }
 0x1d7   : > { %2000 = vmatprep.subr.bf16.mxu1 %v1999_v18 }
 0x1d8   : > { %2030 = vmatpush3.bf16.msra.mxu0 %v2027_v39 }
 0x1d9   : > { %2032 = vmatprep.subr.bf16.mxu0 %v2031_v42 }
 0x1da   : > { %2002 = vmatpush3.bf16.msra.mxu1 %v1999_v18 }
 0x1db   : > { %2004 = vmatprep.subr.bf16.mxu1 %v2003_v22 }
 0x1dc   : > { %2034 = vmatpush3.bf16.msra.mxu0 %v2031_v42 }
 0x1dd   : > { %2036 = vmatprep.subr.bf16.mxu0 %v2035_v45 }
 0x1de   : > { %2006 = vmatpush3.bf16.msra.mxu1 %v2003_v22 }
 0x1df   : > { %2008 = vmatprep.subr.bf16.mxu1 %v2007_v25 }
 0x1e0   : > { %2038 = vmatpush3.bf16.msra.mxu0 %v2035_v45 }
 0x1e1   : > { %2040 = vmatprep.subr.bf16.mxu0 %v2039_v48 }
 0x1e2   : > { %2010 = vmatpush3.bf16.msra.mxu1 %v2007_v25 }
 0x1e3   : > { %2012 = vmatprep.subr.bf16.mxu1 %v2011_v28 }
 0x1e4   : > { %2042 = vmatpush3.bf16.msra.mxu0 %v2039_v48  ;;  %v2063_v48 = vpack.c.bf16 %v1202_v47, %v1201_v46 }
 0x1e5   : > { %2044 = vmatprep.subr.bf16.mxu0 %v2043_v51 }
 0x1e6   : > { %2014 = vmatpush3.bf16.msra.mxu1 %v2011_v28 }
 0x1e7   : > { %2048 = vmatprep.subr.bf16.mxu1 %v2047_v56 }
 0x1e8   : > { %2046 = vmatpush3.bf16.msra.mxu0 %v2043_v51  ;;  %v2067_v51 = vpack.c.bf16 %v1204_v50, %v1203_v49 }
 0x1e9   : > { %1777 = vmatmul.mubr.f32.vlgmr.msra.gmra.mrb[4].mxu1 %v924_v29  ;;  %v1025_v29 = vsub.s32 3, %v1024_v4  ;;  %v1310_v4 = vld [vmem:[#allocation13 + $0x38] sm:$0xff] }
 0x1ea   : > { %2050 = vmatpush3.bf16.msra.mxu1 %v2047_v56  ;;  %v1208_v56 = vld [vmem:[#allocation12 + $0x78] sm:$0xff] }
 0x1eb   : > { %2052 = vmatprep.subr.bf16.mxu1 %v2051_v58  ;;  %v2075_v57 = vpack.c.bf16 %v1208_v56, %v1207_v55 }
 0x1ee   : > { %2054 = vmatpush3.bf16.msra.mxu1 %v2051_v58  ;;  %v1303_v58 = vld [vmem:[#allocation13] sm:$0xff] }
 0x1ef   : > { %2056 = vmatprep.subr.bf16.mxu1 %v2055_v61 }
 0x1f2   : > { %2058 = vmatpush3.bf16.msra.mxu1 %v2055_v61  ;;  %v2079_v61 = vpack.c.bf16 %v1304_v59, %v1303_v58 }
 0x1f3   : > { %2060 = vmatprep.subr.bf16.mxu1 %v2059_v2 }
 0x1f4   : > { %2080 = vmatprep.subr.bf16.mxu0 %v2079_v61 }
 0x1f6   : > { %2062 = vmatpush3.bf16.msra.mxu1 %v2059_v2  ;;  %v2087_v2 = vpack.c.bf16 %v1308_v1, %v1307_v0 }
 0x1f7   : > { %2064 = vmatprep.subr.bf16.mxu1 %v2063_v48 }
 0x1fa   : > { %2066 = vmatpush3.bf16.msra.mxu1 %v2063_v48 }
 0x1fb   : > { %2068 = vmatprep.subr.bf16.mxu1 %v2067_v51 }
 0x1fe   : > { %2070 = vmatpush3.bf16.msra.mxu1 %v2067_v51 }
 0x1ff   : > { %2072 = vmatprep.subr.bf16.mxu1 %v2071_v54 }
 0x202   : > { %2074 = vmatpush3.bf16.msra.mxu1 %v2071_v54  ;;  %v1606_v54 = vld [vmem:[%s2992_s19] ss:$0 sm:$0xff] }
 0x203   : > { %2076 = vmatprep.subr.bf16.mxu1 %v2075_v57 }
 0x206   : > { %2078 = vmatpush3.bf16.msra.mxu1 %v2075_v57 }
 0x29c   : > { %v829_v11 = vpop.f32.mrb[0].mxu1  ;;  %v906_v12 = vpop.f32.mrb[2].mxu0 }
 0x29d   : > { %v2847_v13 = vrot.slane %v906_v12, %v1029_v5  ;;  %v2849_v14 = vrot.slane %v906_v12, %v1297_v6  ;;  %v831_v15 = vpop.f32.mrb[1].mxu1  ;;  %v908_v16 = vpop.f32.mrb[3].mxu0  ;;  %v1026_v17 = vrot.slane %v829_v11, %v1025_v29  ;;  %v1038_v19 = vrot.slane %v829_v11, %v1037_v30  ;;  %v1311_v6 = vld [vmem:[#allocation13 + $0x40] sm:$0xff] }
 0x29e   : > { %v2851_v18 = vrot.slane %v831_v15, %v1157_v7  ;;  %v2853_v20 = vrot.slane %v831_v15, %v1169_v8  ;;  %v2855_v21 = vrot.slane %v908_v16, %v1161_v9  ;;  %v2857_v22 = vrot.slane %v908_v16, %v1407_v10  ;;  %v1314_v10 = vld [vmem:[#allocation13 + $0x58] sm:$0xff]  ;;  %v1604_v12 = vld [vmem:[%s2942_s9] ss:$0 sm:$0xff] }
 0x2a0   : > { %v835_v23 = vpop.f32.mrb[2].mxu1  ;;  %v912_v24 = vpop.f32.mrb[4].mxu0 }
 0x2a1   : > { %v837_v25 = vpop.f32.mrb[3].mxu1  ;;  %v913_v26 = vpop.f32.mrb[5].mxu0  ;;  %v1030_v33 = vrot.slane %v835_v23, %v1029_v5  ;;  %v1042_v34 = vrot.slane %v835_v23, %v1025_v29  ;;  %v2091_v5 = vpack.c.bf16 %v1310_v4, %v1309_v3 }
 0x2a2   : > { %v2859_v27 = vrot.slane %v837_v25, %v1161_v9  ;;  %v2861_v28 = vrot.slane %v837_v25, %v1157_v7  ;;  %v1312_v7 = vld [vmem:[#allocation13 + $0x48] sm:$0xff]  ;;  %v1313_v9 = vld [vmem:[#allocation13 + $0x50] sm:$0xff]  ;;  %v1182_v29 = vpop.permute.xlu0 %1181 }
 0x2a3   : > { %v2095_v8 = vpack.c.bf16 %v1312_v7, %v1311_v6  ;;  %v2099_v11 = vpack.c.bf16 %v1314_v10, %v1313_v9 }
 0x2bc   : > { %v1778_v32 = vpop.f32.mrb[4].mxu1 }
 0x2bd   : > { %v1020_v35 = vadd.f32 %v1778_v32, %v1603_v31  ;;  %v1014_v36 = vpop.f32.mrb[5].mxu1 }
 0x2be   : > { %v1015_v37 = vadd.f32 %v1603_v31, %v1014_v36 }
 0x2bf   : > { %v1032_v38 = vadd.f32 %v1030_v33, %v1020_v35  ;;  %v1044_v39 = vadd.f32 %v1042_v34, %v1020_v35 }
 0x2c0   : > { %v1031_v40 = vadd.f32 %v1026_v17, %v1015_v37  ;;  %v1043_v41 = vadd.f32 %v1038_v19, %v1015_v37  ;;  %v1187_v19 = vpop.permute.xlu0 %1186 }
 0x2c1   : > { %v1034_v43 = vmax.f32 %v1032_v38, 0.0  ;;  %v1046_v45 = vmax.f32 %v1044_v39, 0.0 }
 0x2c2   : > { %v1033_v42 = vmax.f32 %v1031_v40, 0.0  ;;  %v1045_v44 = vmax.f32 %v1043_v41, 0.0 }
 0x2c4   : > { %1811 = vmatprep.mubr.f32.mxu0 %v1033_v42  ;;  %v1316_v42 = vld [vmem:[#allocation13 + $0x68] sm:$0xff] }
 0x2c5   : > { %1812 = vmatmul.mubr.f32.vlgmr.msra.gmra.mrb[6].mxu0 %v1034_v43 }
 0x2c6   : > { %1814 = vmatprep.mubr.f32.mxu0 %v1045_v44  ;;  %2082 = vmatpush3.bf16.msra.mxu0 %v2079_v61  ;;  %v1317_v44 = vld [vmem:[#allocation13 + $0x70] sm:$0xff] }
 0x2c7   : > { %2084 = vmatprep.subr.bf16.mxu0 %v2083_v63 }
 0x2c9   : > { %1815 = vmatmul.mubr.f32.gmra.mrb[8].mxu0 %v1046_v45  ;;  %v1605_v45 = vld [vmem:[%s2944_s11] ss:$0 sm:$0xff] }
 0x2ca   : > { %2086 = vmatpush3.bf16.msra.mxu0 %v2083_v63 }
 0x2cb   : > { %2088 = vmatprep.subr.bf16.mxu0 %v2087_v2 }
 0x2ce   : > { %2090 = vmatpush3.bf16.msra.mxu0 %v2087_v2 }
 0x2cf   : > { %2092 = vmatprep.subr.bf16.mxu0 %v2091_v5 }
 0x2d2   : > { %2094 = vmatpush3.bf16.msra.mxu0 %v2091_v5 }
 0x2d3   : > { %2096 = vmatprep.subr.bf16.mxu0 %v2095_v8 }
 0x2d6   : > { %2098 = vmatpush3.bf16.msra.mxu0 %v2095_v8 }
 0x2d7   : > { %2100 = vmatprep.subr.bf16.mxu0 %v2099_v11 }
 0x2da   : > { %2102 = vmatpush3.bf16.msra.mxu0 %v2099_v11 }
 0x398   : > { %v1813_v15 = vpop.f32.mrb[6].mxu0 }
 0x399   : > { %v1142_v16 = vadd.f32 %v1813_v15, %v1604_v12  ;;  %v1136_v23 = vpop.f32.mrb[7].mxu0 }
 0x39a   : > { %v1137_v24 = vadd.f32 %v1604_v12, %v1136_v23 }
 0x39b   : > { %v1164_v25 = vadd.f32 %v2859_v27, %v1142_v16 }
 0x39c   : > { %v1163_v26 = vadd.f32 %v2851_v18, %v1137_v24  ;;  %v1816_v30 = vpop.f32.mrb[8].mxu0  ;;  %v1315_v18 = vld [vmem:[#allocation13 + $0x60] sm:$0xff] }
 0x39d   : > { %v1152_v31 = vadd.f32 %v1816_v30, %v1604_v12  ;;  %v1146_v32 = vpop.f32.mrb[9].mxu0  ;;  %v1166_v37 = vmax.f32 %v1164_v25, 0.0  ;;  %v2103_v43 = vpack.c.bf16 %v1316_v42, %v1315_v18 }
 0x39e   : > { %v1147_v33 = vadd.f32 %v1604_v12, %v1146_v32  ;;  %v1165_v39 = vmax.f32 %v1163_v26, 0.0 }
 0x39f   : > { %v1176_v34 = vadd.f32 %v2861_v28, %v1152_v31  ;;  %2104 = vmatprep.subr.bf16.mxu0 %v2103_v43  ;;  %v1318_v28 = vld [vmem:[#allocation13 + $0x78] sm:$0xff] }
 0x3a0   : > { %v1175_v35 = vadd.f32 %v2853_v20, %v1147_v33  ;;  %2106 = vmatpush3.bf16.msra.mxu0 %v2103_v43  ;;  %v2107_v20 = vpack.c.bf16 %v1318_v28, %v1317_v44 }
 0x3a1   : > { %v1178_v36 = vmax.f32 %v1176_v34, 0.0 }
 0x3a2   : > { %v1177_v17 = vmax.f32 %v1175_v35, 0.0  ;;  %2108 = vmatprep.subr.bf16.mxu0 %v2107_v20 }
 0x3a3   : > { %v1190_v38 = vmul.f32 %v1187_v19, %v1178_v36 }
 0x3a4   : > { %v1189_v40 = vmul.f32 %v1182_v29, %v1177_v17  ;;  %2110 = vmatpush3.bf16.msra.mxu0 %v2107_v20 }
 0x3a5   : > { %v1192_v41 = vadd.f32 %v1190_v38, %v1166_v37 }
 0x3a6   : > { %v1191_v27 = vadd.f32 %v1189_v40, %v1165_v39 }
 0x3a8   : > { %1849 = vmatprep.mubr.f32.mxu1 %v1191_v27 }
 0x3a9   : > { %1850 = vmatmul.mubr.f32.vlgmr.msra.gmra.mrb[6].mxu1 %v1192_v41 }
 0x47c   : > { %v1851_v46 = vpop.f32.mrb[6].mxu1 }
 0x47d   : > { %v1288_v47 = vadd.f32 %v1851_v46, %v1605_v45  ;;  %v1282_v48 = vpop.f32.mrb[7].mxu1 }
 0x47e   : > { %v1283_v49 = vadd.f32 %v1605_v45, %v1282_v48 }
 0x47f   : > { %v1300_v50 = vadd.f32 %v2849_v14, %v1288_v47 }
 0x480   : > { %v1299_v51 = vadd.f32 %v2847_v13, %v1283_v49 }
 0x481   : > { %v1302_v53 = vmax.f32 %v1300_v50, 0.0 }
 0x482   : > { %v1301_v52 = vmax.f32 %v1299_v51, 0.0 }
 0x484   : > { %1884 = vmatprep.mubr.f32.mxu0 %v1301_v52 }
 0x485   : > { %1885 = vmatmul.mubr.f32.vlgmr.msra.gmra.mrb[10].mxu0 %v1302_v53 }
 0x558   : > { %v1886_v55 = vpop.f32.mrb[10].mxu0 }
 0x559   : > { %v1398_v56 = vadd.f32 %v1886_v55, %v1606_v54  ;;  %v1392_v57 = vpop.f32.mrb[11].mxu0 }
 0x55a   : > { %v1393_v14 = vadd.f32 %v1606_v54, %v1392_v57 }
 0x55b   : > { %v1410_v58 = vadd.f32 %v2857_v22, %v1398_v56 }
 0x55c   : > { %v1409_v13 = vadd.f32 %v2855_v21, %v1393_v14 }
 0x55d   : > { %v1412_v59 = vmax.f32 %v1410_v58, 0.0 }
 0x55e   : > { %v1411_v60 = vmax.f32 %v1409_v13, 0.0 }
 0x55f   : > { %1414 = vst [vmem:[%s579_s2 + $0x8] sm:$0xff] %v1412_v59 }
 0x560   : > { %1413 = vst [vmem:[%s579_s2] sm:$0xff] %v1411_v60 }
 0x561   : > { %2426 = shalt.err (!%p2423_p11)
}
 0x562   : > { %s2427_s14 = scalar_lea.hbm %s2887_s17, 256  ;;  %s2431_s13 = scalar_lea.hbm %s2995_s22, 512 }
 0x563   : > { %p2428_p12 = scmp.ne.s32.totalorder %s2887_s17, %s2427_s14  ;;  %p2432_p9 = scmp.lt.u32.totalorder %s2887_s17, %s2995_s22 }
 0x564   : > { %p2433_p10 = scmp.lt.u32.totalorder %s2431_s13, %s2427_s14  ;;  %p2435_p1 = scmp.lt.u32.totalorder %s2427_s14, %s2887_s17 }
 0x565   : > { %p2429_p5 = pnand %p2428_p12, %p2996_p2 }
 0x566   : > { %p2434_p13 = por %p2433_p10, %p2432_p9 }
 0x567   : > { %p2430_p6 = pneg %p2429_p5 }
 0x568   : > { %p2436_p3 = por %p2435_p1, %p2434_p13 }
 0x56a   : > { %p2437_p0 = pnand %p2436_p3, %p2430_p6 }
 0x56c   : > { %2440 = shalt.err (!%p2437_p0)
}
 0x56d   : > { %s2511_s2 = smov 128   ;;  %s2512_s20 = smov 8  }
 0x56e   : > { %2139 = dma.vmem_to_hbm [thread:$0]  (%p2996_p2), %s2890_s29, 256, %s2887_s17, %s2892_s21, %s2511_s2, %s2511_s2, %s2512_s20  }
 0x56f PF: > { %s2997_s23 = sld [smem:[#allocation24_spill]]  ;;  %s2998_s16 = sld [smem:[#allocation22_spill]] }
 0x570   : > { %s2999_s26 = sld [smem:[#allocation28_spill]] }
 0x575   : > { %p2181_p4 = scmp.ge.s32.totalorder %s2997_s23, 2  ;;  %s1444_s27 = sand.u32 1, %s2998_s16  }
 0x576   : > { %p3000_p7 = scmp.ne.s32.totalorder %s2999_s26, 0  ;;  %s1445_s15 = scalar_lea.sflag [#allocation4], %s1444_s27 }
 0x578   : > { %p2164_p8 = pnand %p2181_p4, %p3000_p7 }
 0x57a   : > { %2478 = dma.done.wait (!%p2164_p8), %s1445_s15, 256  }
 0x57b   : > { %2480 = vsyncadd (!%p2164_p8), %s1445_s15, 4294967040  ;;  %s3001_s16 = sld [smem:[#allocation25_spill]]  ;;  %s3002_s18 = sld [smem:[#allocation23_spill]] }
 0x57c   : > { %s3003_s15 = sld [smem:[#allocation26_spill]]  ;;  %s3004_s29 = smov %s2487_s30 }
 0x581   : > { %p29_p11 = scmp.ge.s32.totalorder %s3001_s16, 4   ;;  %s3005_s30 = smov %s3002_s18 }
 0x583   :  { %31 = sbr.rel (!%p29_p11) target bundleno = 13 (0xd), region = 145 }
 0x58a   :  { %1450 = vsyncpa [#allocation3], 1 }
 0x58b   :  { %1452 = vsyncpa [#allocation3 + $0x1], 1 }
 0x58c   :  { %1453 = vsyncpa [#allocation8], 1 }
 0x58d   :  { %1454 = vsyncpa [#allocation11], 1 }
 0x58e   :  { %1455 = vsyncpa [#allocation14], 1 }
 0x58f   :  { %1456 = vsyncpa [#allocation4], 1 }
 0x590   :  { %1458 = vsyncpa [#allocation4 + $0x1], 1 }
 0x591   :  { %1459 = vsyncpa [#allocation5], 1 }
 0x592   :  { %1461 = vsyncpa [#allocation5 + $0x1], 1 }

</bundles_post_ra>
